<compile_context>
chip_gen: v6e
topology: v6e:2x2x1
jax: 0.10.0
libtpu: 0.0.40
codegen_flags: <defaults>
</compile_context>

<pallas_src>
import functools

import jax
import jax.numpy as jnp
from jax.experimental import pallas as pl
from jax.experimental.pallas import tpu as pltpu

# bf16 for MXU operands; f32 accumulation / gate math / recurrent state.
COMPUTE_DTYPE = jnp.bfloat16


# ------------------------------ fused kernel ---------------------------------

def _fused_lstm_fc_kernel(*refs, T, B, H, num_layers):
    """Whole LSTMRegressor forward in one kernel invocation (no grid).

    refs layout:
      refs[0]                            : x (T, B, D_in) bf16, time-major
      refs[1+3l], refs[2+3l], refs[3+3l] : W_ih_l (D_l, 4H) bf16, W_hh_l (H, 4H) bf16,
                                           bias_l (1, 4H) f32   (gate order i,f,g,o)
      refs[1+3L], refs[2+3L]             : fc_w (H, O) bf16, fc_b (1, O) f32
      refs[3+3L]                         : out (B, O) f32
    """
    x_ref = refs[0]
    fc_w_ref = refs[1 + 3 * num_layers]
    fc_b_ref = refs[2 + 3 * num_layers]
    out_ref = refs[3 + 3 * num_layers]

    w_ih = [refs[1 + 3 * l][...] for l in range(num_layers)]   # (D_l, 4H) bf16
    w_hh = [refs[2 + 3 * l][...] for l in range(num_layers)]   # (H, 4H)   bf16
    bias = [refs[3 + 3 * l][...] for l in range(num_layers)]   # (1, 4H)   f32

    # Hoisted layer-0 input projection (independent of the recurrence): per-t aligned tile
    # loads x_ref[t] -> one small MXU matmul each, all off the serial critical path.
    gx0 = [
        jnp.dot(x_ref[t], w_ih[0], preferred_element_type=jnp.float32) + bias[0]
        for t in range(T)
    ]                                                          # T x (B, 4H) f32

    # Recurrent state, f32 across all steps/layers.
    h = [jnp.zeros((B, H), jnp.float32) for _ in range(num_layers)]
    c = [jnp.zeros((B, H), jnp.float32) for _ in range(num_layers)]

    # Wavefront: macro-step s runs layer l's time step t = s - l.
    for s in range(T + num_layers - 1):
        # Snapshot of start-of-macro-step hidden states: layer l reads layer l-1's output of
        # the PREVIOUS macro-step (== h^{l-1}_t), and its own h^l_{t-1}.
        h_prev = list(h)
        for l in range(num_layers):
            t = s - l
            if t < 0 or t >= T:
                continue

            rec = jnp.dot(h_prev[l].astype(COMPUTE_DTYPE), w_hh[l],
                          preferred_element_type=jnp.float32)          # (B, 4H) f32
            if l == 0:
                gates = gx0[t] + rec
            else:
                gates = (bias[l] + rec
                         + jnp.dot(h_prev[l - 1].astype(COMPUTE_DTYPE), w_ih[l],
                                   preferred_element_type=jnp.float32))

            # Full-vreg transcendentals: 2 EUP pushes per step instead of 4.
            sig = jax.nn.sigmoid(gates)                                # (B, 4H)
            tnh = jnp.tanh(gates)                                      # (B, 4H)
            i_g = sig[:, 0 * H:1 * H]
            f_g = sig[:, 1 * H:2 * H]
            g_g = tnh[:, 2 * H:3 * H]
            o_g = sig[:, 3 * H:4 * H]

            c[l] = f_g * c[l] + i_g * g_g
            h[l] = o_g * jnp.tanh(c[l])

    # Final Linear on the last time step's hidden state of the top layer (== lstm_out[:, -1, :]).
    out = jnp.dot(h[num_layers - 1].astype(fc_w_ref.dtype), fc_w_ref[...],
                  preferred_element_type=jnp.float32) + fc_b_ref[...]
    out_ref[...] = out.astype(out_ref.dtype)


def _fused_forward(x_tbd, flat_params, *, T, B, D, H, num_layers, output_size):
    kernel = functools.partial(_fused_lstm_fc_kernel, T=T, B=B, H=H,
                               num_layers=num_layers)
    n_in = 1 + len(flat_params)
    vmem_spec = pl.BlockSpec(memory_space=pltpu.MemorySpace.VMEM)

    # Advisory cost hint for XLA's scheduler around this small latency-bound call.
    flops = (2 * T * B * D * 4 * H
             + 2 * (num_layers - 1) * T * B * H * 4 * H
             + 2 * num_layers * T * B * H * 4 * H
             + 2 * B * H * output_size)
    transcendentals = num_layers * T * B * (4 * H + 4 * H + H)
    bytes_accessed = (int(x_tbd.size) * x_tbd.dtype.itemsize
                      + sum(int(p.size) * p.dtype.itemsize for p in flat_params)
                      + B * output_size * 4)
    cost = pl.CostEstimate(flops=int(flops),
                           transcendentals=int(transcendentals),
                           bytes_accessed=int(bytes_accessed))

    return pl.pallas_call(
        kernel,
        out_shape=jax.ShapeDtypeStruct((B, output_size), jnp.float32),
        in_specs=[vmem_spec] * n_in,     # whole arrays VMEM-resident, no grid / no pipelining
        out_specs=vmem_spec,
        cost_estimate=cost,
    )(x_tbd, *flat_params)


# ------------------------------ model wrapper --------------------------------

def init_params(key, input_size, hidden_size, num_layers, output_size):
    """Deterministic init mirroring nn.LSTM / nn.Linear parameter shapes.

    PyTorch weight_ih_l{k}: (4H, D_in) -- stored here transposed as (D_in, 4H),
    gate order (i, f, g, o). Biases b_ih + b_hh are pre-summed into one (1, 4H).
    Parameters are kept in f32; bf16 casts for the MXU happen in the wrapper.
    """
    k_lstm = 1.0 / jnp.sqrt(jnp.float32(hidden_size))
    layers = []
    for layer in range(num_layers):
        d_in = input_size if layer == 0 else hidden_size
        key, k1, k2, k3, k4 = jax.random.split(key, 5)
        w_ih = jax.random.uniform(k1, (d_in, 4 * hidden_size),
                                  minval=-k_lstm, maxval=k_lstm, dtype=jnp.float32)
        w_hh = jax.random.uniform(k2, (hidden_size, 4 * hidden_size),
                                  minval=-k_lstm, maxval=k_lstm, dtype=jnp.float32)
        b_ih = jax.random.uniform(k3, (1, 4 * hidden_size),
                                  minval=-k_lstm, maxval=k_lstm, dtype=jnp.float32)
        b_hh = jax.random.uniform(k4, (1, 4 * hidden_size),
                                  minval=-k_lstm, maxval=k_lstm, dtype=jnp.float32)
        layers.append({"w_ih": w_ih, "w_hh": w_hh, "b": b_ih + b_hh})

    k_fc = 1.0 / jnp.sqrt(jnp.float32(hidden_size))
    key, k1, k2 = jax.random.split(key, 3)
    fc_w = jax.random.uniform(k1, (hidden_size, output_size),
                              minval=-k_fc, maxval=k_fc, dtype=jnp.float32)
    fc_b = jax.random.uniform(k2, (1, output_size),
                              minval=-k_fc, maxval=k_fc, dtype=jnp.float32)
    return {"lstm": layers, "fc_w": fc_w, "fc_b": fc_b}


@jax.jit
def lstm_regressor_forward(x, params):
    """x: (B, T, input_size), batch-first like nn.LSTM(batch_first=True)."""
    B, T, D = x.shape
    layers = params["lstm"]
    num_layers = len(layers)
    H = layers[0]["w_hh"].shape[0]
    output_size = params["fc_w"].shape[1]

    # Time-major layout (T, B, D): per-t leading-dim tile access inside the kernel.
    x_tbd = jnp.transpose(x, (1, 0, 2)).astype(COMPUTE_DTYPE)

    flat = []
    for layer in layers:
        flat += [layer["w_ih"].astype(COMPUTE_DTYPE),
                 layer["w_hh"].astype(COMPUTE_DTYPE),
                 layer["b"].astype(jnp.float32)]
    flat += [params["fc_w"].astype(COMPUTE_DTYPE),
             params["fc_b"].astype(jnp.float32)]

    return _fused_forward(x_tbd, flat, T=T, B=B, D=D, H=H,
                          num_layers=num_layers, output_size=output_size)


# -------------------------- pure-JAX f32 reference ---------------------------

def _reference_forward(x, params):
    """f32 reference matching nn.LSTM(batch_first=True) + Linear inference."""
    B, _, _ = x.shape
    seq = x.astype(jnp.float32)
    for layer in params["lstm"]:
        H = layer["w_hh"].shape[0]
        w_ih, w_hh, b = layer["w_ih"], layer["w_hh"], layer["b"]

        def step(carry, x_t, w_ih=w_ih, w_hh=w_hh, b=b, H=H):
            h, c = carry
            gates = x_t @ w_ih + h @ w_hh + b
            i = jax.nn.sigmoid(gates[:, 0 * H:1 * H])
            f = jax.nn.sigmoid(gates[:, 1 * H:2 * H])
            g = jnp.tanh(gates[:, 2 * H:3 * H])
            o = jax.nn.sigmoid(gates[:, 3 * H:4 * H])
            c = f * c + i * g
            h = o * jnp.tanh(c)
            return (h, c), h

        h0 = jnp.zeros((B, H), jnp.float32)
        (_, _), hs = jax.lax.scan(step, (h0, h0), jnp.transpose(seq, (1, 0, 2)))
        seq = jnp.transpose(hs, (1, 0, 2))
    last = seq[:, -1, :]
    return last @ params["fc_w"] + params["fc_b"]


# ----------------------------------- main ------------------------------------

if __name__ == "__main__":
    B, T = 2, 8
    input_size, hidden_size, num_layers, output_size = 16, 32, 2, 1

    key = jax.random.PRNGKey(0)
    key, kx, kp = jax.random.split(key, 3)
    x = jax.random.normal(kx, (B, T, input_size), dtype=jnp.float32)
    params = init_params(kp, input_size, hidden_size, num_layers, output_size)

    out = lstm_regressor_forward(x, params)
    jax.block_until_ready(out)
    assert out.shape == (B, output_size), out.shape

    ref = _reference_forward(x, params)
    err = float(jnp.max(jnp.abs(out - ref)))
    assert err < 5e-2, f"max abs err vs f32 reference: {err}"

    print("KERNEL_OK")
</pallas_src>

<mosaic_0001>
module attributes {stable_mosaic.version = 11 : i64} {
  func.func @_fused_lstm_fc_kernel(%arg0: memref<8x2x16xbf16, #tpu.memory_space<vmem>>, %arg1: memref<16x128xbf16, #tpu.memory_space<vmem>>, %arg2: memref<32x128xbf16, #tpu.memory_space<vmem>>, %arg3: memref<1x128xf32, #tpu.memory_space<vmem>>, %arg4: memref<32x128xbf16, #tpu.memory_space<vmem>>, %arg5: memref<32x128xbf16, #tpu.memory_space<vmem>>, %arg6: memref<1x128xf32, #tpu.memory_space<vmem>>, %arg7: memref<32x1xbf16, #tpu.memory_space<vmem>>, %arg8: memref<1x1xf32, #tpu.memory_space<vmem>>, %arg9: memref<2x1xf32, #tpu.memory_space<vmem>>) attributes {dimension_semantics = [], scalar_prefetch = 0 : i64, scratch_operands = 0 : i64, tpu.core_type = #tpu.core_type<tc>} {
    %c0 = arith.constant 0 : index
    %c0_0 = arith.constant 0 : index
    %0 = vector.load %arg1[%c0, %c0_0] : memref<16x128xbf16, #tpu.memory_space<vmem>>, vector<16x128xbf16>
    %c0_1 = arith.constant 0 : index
    %c0_2 = arith.constant 0 : index
    %1 = vector.load %arg4[%c0_1, %c0_2] : memref<32x128xbf16, #tpu.memory_space<vmem>>, vector<32x128xbf16>
    %c0_3 = arith.constant 0 : index
    %c0_4 = arith.constant 0 : index
    %2 = vector.load %arg2[%c0_3, %c0_4] : memref<32x128xbf16, #tpu.memory_space<vmem>>, vector<32x128xbf16>
    %c0_5 = arith.constant 0 : index
    %c0_6 = arith.constant 0 : index
    %3 = vector.load %arg5[%c0_5, %c0_6] : memref<32x128xbf16, #tpu.memory_space<vmem>>, vector<32x128xbf16>
    %c0_7 = arith.constant 0 : index
    %c0_8 = arith.constant 0 : index
    %4 = vector.load %arg3[%c0_7, %c0_8] : memref<1x128xf32, #tpu.memory_space<vmem>>, vector<1x128xf32>
    %c0_9 = arith.constant 0 : index
    %c0_10 = arith.constant 0 : index
    %5 = vector.load %arg6[%c0_9, %c0_10] : memref<1x128xf32, #tpu.memory_space<vmem>>, vector<1x128xf32>
    %c0_11 = arith.constant 0 : index
    %c0_12 = arith.constant 0 : index
    %c0_13 = arith.constant 0 : index
    %6 = vector.load %arg0[%c0_11, %c0_12, %c0_13] : memref<8x2x16xbf16, #tpu.memory_space<vmem>>, vector<1x2x16xbf16>
    %7 = vector.shape_cast %6 : vector<1x2x16xbf16> to vector<2x16xbf16>
    %cst = arith.constant dense<0.000000e+00> : vector<2x128xf32>
    %8 = tpu.matmul %7, %0, %cst {dimension_numbers = #tpu.dot_dimension_numbers<[1], [0], [0], [1], [0, 0, 1, 1], [], []>} : vector<2x16xbf16>, vector<16x128xbf16>, vector<2x128xf32> -> vector<2x128xf32>
    %9 = vector.broadcast %4 : vector<1x128xf32> to vector<2x128xf32>
    %10 = arith.addf %8, %9 : vector<2x128xf32>
    %c1 = arith.constant 1 : index
    %c0_14 = arith.constant 0 : index
    %c0_15 = arith.constant 0 : index
    %11 = vector.load %arg0[%c1, %c0_14, %c0_15] : memref<8x2x16xbf16, #tpu.memory_space<vmem>>, vector<1x2x16xbf16>
    %12 = vector.shape_cast %11 : vector<1x2x16xbf16> to vector<2x16xbf16>
    %cst_16 = arith.constant dense<0.000000e+00> : vector<2x128xf32>
    %13 = tpu.matmul %12, %0, %cst_16 {dimension_numbers = #tpu.dot_dimension_numbers<[1], [0], [0], [1], [0, 0, 1, 1], [], []>} : vector<2x16xbf16>, vector<16x128xbf16>, vector<2x128xf32> -> vector<2x128xf32>
    %14 = vector.broadcast %4 : vector<1x128xf32> to vector<2x128xf32>
    %15 = arith.addf %13, %14 : vector<2x128xf32>
    %c2 = arith.constant 2 : index
    %c0_17 = arith.constant 0 : index
    %c0_18 = arith.constant 0 : index
    %16 = vector.load %arg0[%c2, %c0_17, %c0_18] : memref<8x2x16xbf16, #tpu.memory_space<vmem>>, vector<1x2x16xbf16>
    %17 = vector.shape_cast %16 : vector<1x2x16xbf16> to vector<2x16xbf16>
    %cst_19 = arith.constant dense<0.000000e+00> : vector<2x128xf32>
    %18 = tpu.matmul %17, %0, %cst_19 {dimension_numbers = #tpu.dot_dimension_numbers<[1], [0], [0], [1], [0, 0, 1, 1], [], []>} : vector<2x16xbf16>, vector<16x128xbf16>, vector<2x128xf32> -> vector<2x128xf32>
    %19 = vector.broadcast %4 : vector<1x128xf32> to vector<2x128xf32>
    %20 = arith.addf %18, %19 : vector<2x128xf32>
    %c3 = arith.constant 3 : index
    %c0_20 = arith.constant 0 : index
    %c0_21 = arith.constant 0 : index
    %21 = vector.load %arg0[%c3, %c0_20, %c0_21] : memref<8x2x16xbf16, #tpu.memory_space<vmem>>, vector<1x2x16xbf16>
    %22 = vector.shape_cast %21 : vector<1x2x16xbf16> to vector<2x16xbf16>
    %cst_22 = arith.constant dense<0.000000e+00> : vector<2x128xf32>
    %23 = tpu.matmul %22, %0, %cst_22 {dimension_numbers = #tpu.dot_dimension_numbers<[1], [0], [0], [1], [0, 0, 1, 1], [], []>} : vector<2x16xbf16>, vector<16x128xbf16>, vector<2x128xf32> -> vector<2x128xf32>
    %24 = vector.broadcast %4 : vector<1x128xf32> to vector<2x128xf32>
    %25 = arith.addf %23, %24 : vector<2x128xf32>
    %c4 = arith.constant 4 : index
    %c0_23 = arith.constant 0 : index
    %c0_24 = arith.constant 0 : index
    %26 = vector.load %arg0[%c4, %c0_23, %c0_24] : memref<8x2x16xbf16, #tpu.memory_space<vmem>>, vector<1x2x16xbf16>
    %27 = vector.shape_cast %26 : vector<1x2x16xbf16> to vector<2x16xbf16>
    %cst_25 = arith.constant dense<0.000000e+00> : vector<2x128xf32>
    %28 = tpu.matmul %27, %0, %cst_25 {dimension_numbers = #tpu.dot_dimension_numbers<[1], [0], [0], [1], [0, 0, 1, 1], [], []>} : vector<2x16xbf16>, vector<16x128xbf16>, vector<2x128xf32> -> vector<2x128xf32>
    %29 = vector.broadcast %4 : vector<1x128xf32> to vector<2x128xf32>
    %30 = arith.addf %28, %29 : vector<2x128xf32>
    %c5 = arith.constant 5 : index
    %c0_26 = arith.constant 0 : index
    %c0_27 = arith.constant 0 : index
    %31 = vector.load %arg0[%c5, %c0_26, %c0_27] : memref<8x2x16xbf16, #tpu.memory_space<vmem>>, vector<1x2x16xbf16>
    %32 = vector.shape_cast %31 : vector<1x2x16xbf16> to vector<2x16xbf16>
    %cst_28 = arith.constant dense<0.000000e+00> : vector<2x128xf32>
    %33 = tpu.matmul %32, %0, %cst_28 {dimension_numbers = #tpu.dot_dimension_numbers<[1], [0], [0], [1], [0, 0, 1, 1], [], []>} : vector<2x16xbf16>, vector<16x128xbf16>, vector<2x128xf32> -> vector<2x128xf32>
    %34 = vector.broadcast %4 : vector<1x128xf32> to vector<2x128xf32>
    %35 = arith.addf %33, %34 : vector<2x128xf32>
    %c6 = arith.constant 6 : index
    %c0_29 = arith.constant 0 : index
    %c0_30 = arith.constant 0 : index
    %36 = vector.load %arg0[%c6, %c0_29, %c0_30] : memref<8x2x16xbf16, #tpu.memory_space<vmem>>, vector<1x2x16xbf16>
    %37 = vector.shape_cast %36 : vector<1x2x16xbf16> to vector<2x16xbf16>
    %cst_31 = arith.constant dense<0.000000e+00> : vector<2x128xf32>
    %38 = tpu.matmul %37, %0, %cst_31 {dimension_numbers = #tpu.dot_dimension_numbers<[1], [0], [0], [1], [0, 0, 1, 1], [], []>} : vector<2x16xbf16>, vector<16x128xbf16>, vector<2x128xf32> -> vector<2x128xf32>
    %39 = vector.broadcast %4 : vector<1x128xf32> to vector<2x128xf32>
    %40 = arith.addf %38, %39 : vector<2x128xf32>
    %c7 = arith.constant 7 : index
    %c0_32 = arith.constant 0 : index
    %c0_33 = arith.constant 0 : index
    %41 = vector.load %arg0[%c7, %c0_32, %c0_33] : memref<8x2x16xbf16, #tpu.memory_space<vmem>>, vector<1x2x16xbf16>
    %42 = vector.shape_cast %41 : vector<1x2x16xbf16> to vector<2x16xbf16>
    %cst_34 = arith.constant dense<0.000000e+00> : vector<2x128xf32>
    %43 = tpu.matmul %42, %0, %cst_34 {dimension_numbers = #tpu.dot_dimension_numbers<[1], [0], [0], [1], [0, 0, 1, 1], [], []>} : vector<2x16xbf16>, vector<16x128xbf16>, vector<2x128xf32> -> vector<2x128xf32>
    %44 = vector.broadcast %4 : vector<1x128xf32> to vector<2x128xf32>
    %45 = arith.addf %43, %44 : vector<2x128xf32>
    %cst_35 = arith.constant 0.000000e+00 : f32
    %46 = vector.broadcast %cst_35 : f32 to vector<2x32xf32>
    %cst_36 = arith.constant 0.000000e+00 : f32
    %47 = vector.broadcast %cst_36 : f32 to vector<2x32xf32>
    %cst_37 = arith.constant 0.000000e+00 : f32
    %48 = vector.broadcast %cst_37 : f32 to vector<2x32xf32>
    %cst_38 = arith.constant 0.000000e+00 : f32
    %49 = vector.broadcast %cst_38 : f32 to vector<2x32xf32>
    %50 = arith.truncf %46 : vector<2x32xf32> to vector<2x32xbf16>
    %cst_39 = arith.constant dense<0.000000e+00> : vector<2x128xf32>
    %51 = tpu.matmul %50, %2, %cst_39 {dimension_numbers = #tpu.dot_dimension_numbers<[1], [0], [0], [1], [0, 0, 1, 1], [], []>} : vector<2x32xbf16>, vector<32x128xbf16>, vector<2x128xf32> -> vector<2x128xf32>
    %52 = arith.addf %10, %51 : vector<2x128xf32>
    %53 = arith.negf %52 : vector<2x128xf32>
    %54 = math.exp %53 : vector<2x128xf32>
    %cst_40 = arith.constant 1.000000e+00 : f32
    %55 = vector.broadcast %cst_40 : f32 to vector<2x128xf32>
    %56 = arith.addf %55, %54 : vector<2x128xf32>
    %57 = arith.divf %55, %56 : vector<2x128xf32>
    %58 = math.tanh %52 : vector<2x128xf32>
    %59 = vector.extract_strided_slice %57 {offsets = [0, 0], sizes = [2, 32], strides = [1, 1]} : vector<2x128xf32> to vector<2x32xf32>
    %60 = vector.extract_strided_slice %57 {offsets = [0, 32], sizes = [2, 32], strides = [1, 1]} : vector<2x128xf32> to vector<2x32xf32>
    %61 = vector.extract_strided_slice %58 {offsets = [0, 64], sizes = [2, 32], strides = [1, 1]} : vector<2x128xf32> to vector<2x32xf32>
    %62 = vector.extract_strided_slice %57 {offsets = [0, 96], sizes = [2, 32], strides = [1, 1]} : vector<2x128xf32> to vector<2x32xf32>
    %63 = arith.mulf %60, %48 : vector<2x32xf32>
    %64 = arith.mulf %59, %61 : vector<2x32xf32>
    %65 = arith.addf %63, %64 : vector<2x32xf32>
    %66 = math.tanh %65 : vector<2x32xf32>
    %67 = arith.mulf %62, %66 : vector<2x32xf32>
    %68 = arith.truncf %67 : vector<2x32xf32> to vector<2x32xbf16>
    %cst_41 = arith.constant dense<0.000000e+00> : vector<2x128xf32>
    %69 = tpu.matmul %68, %2, %cst_41 {dimension_numbers = #tpu.dot_dimension_numbers<[1], [0], [0], [1], [0, 0, 1, 1], [], []>} : vector<2x32xbf16>, vector<32x128xbf16>, vector<2x128xf32> -> vector<2x128xf32>
    %70 = arith.addf %15, %69 : vector<2x128xf32>
    %71 = arith.negf %70 : vector<2x128xf32>
    %72 = math.exp %71 : vector<2x128xf32>
    %cst_42 = arith.constant 1.000000e+00 : f32
    %73 = vector.broadcast %cst_42 : f32 to vector<2x128xf32>
    %74 = arith.addf %73, %72 : vector<2x128xf32>
    %75 = arith.divf %73, %74 : vector<2x128xf32>
    %76 = math.tanh %70 : vector<2x128xf32>
    %77 = vector.extract_strided_slice %75 {offsets = [0, 0], sizes = [2, 32], strides = [1, 1]} : vector<2x128xf32> to vector<2x32xf32>
    %78 = vector.extract_strided_slice %75 {offsets = [0, 32], sizes = [2, 32], strides = [1, 1]} : vector<2x128xf32> to vector<2x32xf32>
    %79 = vector.extract_strided_slice %76 {offsets = [0, 64], sizes = [2, 32], strides = [1, 1]} : vector<2x128xf32> to vector<2x32xf32>
    %80 = vector.extract_strided_slice %75 {offsets = [0, 96], sizes = [2, 32], strides = [1, 1]} : vector<2x128xf32> to vector<2x32xf32>
    %81 = arith.mulf %78, %65 : vector<2x32xf32>
    %82 = arith.mulf %77, %79 : vector<2x32xf32>
    %83 = arith.addf %81, %82 : vector<2x32xf32>
    %84 = math.tanh %83 : vector<2x32xf32>
    %85 = arith.mulf %80, %84 : vector<2x32xf32>
    %86 = arith.truncf %47 : vector<2x32xf32> to vector<2x32xbf16>
    %cst_43 = arith.constant dense<0.000000e+00> : vector<2x128xf32>
    %87 = tpu.matmul %86, %3, %cst_43 {dimension_numbers = #tpu.dot_dimension_numbers<[1], [0], [0], [1], [0, 0, 1, 1], [], []>} : vector<2x32xbf16>, vector<32x128xbf16>, vector<2x128xf32> -> vector<2x128xf32>
    %88 = vector.broadcast %5 : vector<1x128xf32> to vector<2x128xf32>
    %89 = arith.addf %88, %87 : vector<2x128xf32>
    %90 = arith.truncf %67 : vector<2x32xf32> to vector<2x32xbf16>
    %cst_44 = arith.constant dense<0.000000e+00> : vector<2x128xf32>
    %91 = tpu.matmul %90, %1, %cst_44 {dimension_numbers = #tpu.dot_dimension_numbers<[1], [0], [0], [1], [0, 0, 1, 1], [], []>} : vector<2x32xbf16>, vector<32x128xbf16>, vector<2x128xf32> -> vector<2x128xf32>
    %92 = arith.addf %89, %91 : vector<2x128xf32>
    %93 = arith.negf %92 : vector<2x128xf32>
    %94 = math.exp %93 : vector<2x128xf32>
    %cst_45 = arith.constant 1.000000e+00 : f32
    %95 = vector.broadcast %cst_45 : f32 to vector<2x128xf32>
    %96 = arith.addf %95, %94 : vector<2x128xf32>
    %97 = arith.divf %95, %96 : vector<2x128xf32>
    %98 = math.tanh %92 : vector<2x128xf32>
    %99 = vector.extract_strided_slice %97 {offsets = [0, 0], sizes = [2, 32], strides = [1, 1]} : vector<2x128xf32> to vector<2x32xf32>
    %100 = vector.extract_strided_slice %97 {offsets = [0, 32], sizes = [2, 32], strides = [1, 1]} : vector<2x128xf32> to vector<2x32xf32>
    %101 = vector.extract_strided_slice %98 {offsets = [0, 64], sizes = [2, 32], strides = [1, 1]} : vector<2x128xf32> to vector<2x32xf32>
    %102 = vector.extract_strided_slice %97 {offsets = [0, 96], sizes = [2, 32], strides = [1, 1]} : vector<2x128xf32> to vector<2x32xf32>
    %103 = arith.mulf %100, %49 : vector<2x32xf32>
    %104 = arith.mulf %99, %101 : vector<2x32xf32>
    %105 = arith.addf %103, %104 : vector<2x32xf32>
    %106 = math.tanh %105 : vector<2x32xf32>
    %107 = arith.mulf %102, %106 : vector<2x32xf32>
    %108 = arith.truncf %85 : vector<2x32xf32> to vector<2x32xbf16>
    %cst_46 = arith.constant dense<0.000000e+00> : vector<2x128xf32>
    %109 = tpu.matmul %108, %2, %cst_46 {dimension_numbers = #tpu.dot_dimension_numbers<[1], [0], [0], [1], [0, 0, 1, 1], [], []>} : vector<2x32xbf16>, vector<32x128xbf16>, vector<2x128xf32> -> vector<2x128xf32>
    %110 = arith.addf %20, %109 : vector<2x128xf32>
    %111 = arith.negf %110 : vector<2x128xf32>
    %112 = math.exp %111 : vector<2x128xf32>
    %cst_47 = arith.constant 1.000000e+00 : f32
    %113 = vector.broadcast %cst_47 : f32 to vector<2x128xf32>
    %114 = arith.addf %113, %112 : vector<2x128xf32>
    %115 = arith.divf %113, %114 : vector<2x128xf32>
    %116 = math.tanh %110 : vector<2x128xf32>
    %117 = vector.extract_strided_slice %115 {offsets = [0, 0], sizes = [2, 32], strides = [1, 1]} : vector<2x128xf32> to vector<2x32xf32>
    %118 = vector.extract_strided_slice %115 {offsets = [0, 32], sizes = [2, 32], strides = [1, 1]} : vector<2x128xf32> to vector<2x32xf32>
    %119 = vector.extract_strided_slice %116 {offsets = [0, 64], sizes = [2, 32], strides = [1, 1]} : vector<2x128xf32> to vector<2x32xf32>
    %120 = vector.extract_strided_slice %115 {offsets = [0, 96], sizes = [2, 32], strides = [1, 1]} : vector<2x128xf32> to vector<2x32xf32>
    %121 = arith.mulf %118, %83 : vector<2x32xf32>
    %122 = arith.mulf %117, %119 : vector<2x32xf32>
    %123 = arith.addf %121, %122 : vector<2x32xf32>
    %124 = math.tanh %123 : vector<2x32xf32>
    %125 = arith.mulf %120, %124 : vector<2x32xf32>
    %126 = arith.truncf %107 : vector<2x32xf32> to vector<2x32xbf16>
    %cst_48 = arith.constant dense<0.000000e+00> : vector<2x128xf32>
    %127 = tpu.matmul %126, %3, %cst_48 {dimension_numbers = #tpu.dot_dimension_numbers<[1], [0], [0], [1], [0, 0, 1, 1], [], []>} : vector<2x32xbf16>, vector<32x128xbf16>, vector<2x128xf32> -> vector<2x128xf32>
    %128 = vector.broadcast %5 : vector<1x128xf32> to vector<2x128xf32>
    %129 = arith.addf %128, %127 : vector<2x128xf32>
    %130 = arith.truncf %85 : vector<2x32xf32> to vector<2x32xbf16>
    %cst_49 = arith.constant dense<0.000000e+00> : vector<2x128xf32>
    %131 = tpu.matmul %130, %1, %cst_49 {dimension_numbers = #tpu.dot_dimension_numbers<[1], [0], [0], [1], [0, 0, 1, 1], [], []>} : vector<2x32xbf16>, vector<32x128xbf16>, vector<2x128xf32> -> vector<2x128xf32>
    %132 = arith.addf %129, %131 : vector<2x128xf32>
    %133 = arith.negf %132 : vector<2x128xf32>
    %134 = math.exp %133 : vector<2x128xf32>
    %cst_50 = arith.constant 1.000000e+00 : f32
    %135 = vector.broadcast %cst_50 : f32 to vector<2x128xf32>
    %136 = arith.addf %135, %134 : vector<2x128xf32>
    %137 = arith.divf %135, %136 : vector<2x128xf32>
    %138 = math.tanh %132 : vector<2x128xf32>
    %139 = vector.extract_strided_slice %137 {offsets = [0, 0], sizes = [2, 32], strides = [1, 1]} : vector<2x128xf32> to vector<2x32xf32>
    %140 = vector.extract_strided_slice %137 {offsets = [0, 32], sizes = [2, 32], strides = [1, 1]} : vector<2x128xf32> to vector<2x32xf32>
    %141 = vector.extract_strided_slice %138 {offsets = [0, 64], sizes = [2, 32], strides = [1, 1]} : vector<2x128xf32> to vector<2x32xf32>
    %142 = vector.extract_strided_slice %137 {offsets = [0, 96], sizes = [2, 32], strides = [1, 1]} : vector<2x128xf32> to vector<2x32xf32>
    %143 = arith.mulf %140, %105 : vector<2x32xf32>
    %144 = arith.mulf %139, %141 : vector<2x32xf32>
    %145 = arith.addf %143, %144 : vector<2x32xf32>
    %146 = math.tanh %145 : vector<2x32xf32>
    %147 = arith.mulf %142, %146 : vector<2x32xf32>
    %148 = arith.truncf %125 : vector<2x32xf32> to vector<2x32xbf16>
    %cst_51 = arith.constant dense<0.000000e+00> : vector<2x128xf32>
    %149 = tpu.matmul %148, %2, %cst_51 {dimension_numbers = #tpu.dot_dimension_numbers<[1], [0], [0], [1], [0, 0, 1, 1], [], []>} : vector<2x32xbf16>, vector<32x128xbf16>, vector<2x128xf32> -> vector<2x128xf32>
    %150 = arith.addf %25, %149 : vector<2x128xf32>
    %151 = arith.negf %150 : vector<2x128xf32>
    %152 = math.exp %151 : vector<2x128xf32>
    %cst_52 = arith.constant 1.000000e+00 : f32
    %153 = vector.broadcast %cst_52 : f32 to vector<2x128xf32>
    %154 = arith.addf %153, %152 : vector<2x128xf32>
    %155 = arith.divf %153, %154 : vector<2x128xf32>
    %156 = math.tanh %150 : vector<2x128xf32>
    %157 = vector.extract_strided_slice %155 {offsets = [0, 0], sizes = [2, 32], strides = [1, 1]} : vector<2x128xf32> to vector<2x32xf32>
    %158 = vector.extract_strided_slice %155 {offsets = [0, 32], sizes = [2, 32], strides = [1, 1]} : vector<2x128xf32> to vector<2x32xf32>
    %159 = vector.extract_strided_slice %156 {offsets = [0, 64], sizes = [2, 32], strides = [1, 1]} : vector<2x128xf32> to vector<2x32xf32>
    %160 = vector.extract_strided_slice %155 {offsets = [0, 96], sizes = [2, 32], strides = [1, 1]} : vector<2x128xf32> to vector<2x32xf32>
    %161 = arith.mulf %158, %123 : vector<2x32xf32>
    %162 = arith.mulf %157, %159 : vector<2x32xf32>
    %163 = arith.addf %161, %162 : vector<2x32xf32>
    %164 = math.tanh %163 : vector<2x32xf32>
    %165 = arith.mulf %160, %164 : vector<2x32xf32>
    %166 = arith.truncf %147 : vector<2x32xf32> to vector<2x32xbf16>
    %cst_53 = arith.constant dense<0.000000e+00> : vector<2x128xf32>
    %167 = tpu.matmul %166, %3, %cst_53 {dimension_numbers = #tpu.dot_dimension_numbers<[1], [0], [0], [1], [0, 0, 1, 1], [], []>} : vector<2x32xbf16>, vector<32x128xbf16>, vector<2x128xf32> -> vector<2x128xf32>
    %168 = vector.broadcast %5 : vector<1x128xf32> to vector<2x128xf32>
    %169 = arith.addf %168, %167 : vector<2x128xf32>
    %170 = arith.truncf %125 : vector<2x32xf32> to vector<2x32xbf16>
    %cst_54 = arith.constant dense<0.000000e+00> : vector<2x128xf32>
    %171 = tpu.matmul %170, %1, %cst_54 {dimension_numbers = #tpu.dot_dimension_numbers<[1], [0], [0], [1], [0, 0, 1, 1], [], []>} : vector<2x32xbf16>, vector<32x128xbf16>, vector<2x128xf32> -> vector<2x128xf32>
    %172 = arith.addf %169, %171 : vector<2x128xf32>
    %173 = arith.negf %172 : vector<2x128xf32>
    %174 = math.exp %173 : vector<2x128xf32>
    %cst_55 = arith.constant 1.000000e+00 : f32
    %175 = vector.broadcast %cst_55 : f32 to vector<2x128xf32>
    %176 = arith.addf %175, %174 : vector<2x128xf32>
    %177 = arith.divf %175, %176 : vector<2x128xf32>
    %178 = math.tanh %172 : vector<2x128xf32>
    %179 = vector.extract_strided_slice %177 {offsets = [0, 0], sizes = [2, 32], strides = [1, 1]} : vector<2x128xf32> to vector<2x32xf32>
    %180 = vector.extract_strided_slice %177 {offsets = [0, 32], sizes = [2, 32], strides = [1, 1]} : vector<2x128xf32> to vector<2x32xf32>
    %181 = vector.extract_strided_slice %178 {offsets = [0, 64], sizes = [2, 32], strides = [1, 1]} : vector<2x128xf32> to vector<2x32xf32>
    %182 = vector.extract_strided_slice %177 {offsets = [0, 96], sizes = [2, 32], strides = [1, 1]} : vector<2x128xf32> to vector<2x32xf32>
    %183 = arith.mulf %180, %145 : vector<2x32xf32>
    %184 = arith.mulf %179, %181 : vector<2x32xf32>
    %185 = arith.addf %183, %184 : vector<2x32xf32>
    %186 = math.tanh %185 : vector<2x32xf32>
    %187 = arith.mulf %182, %186 : vector<2x32xf32>
    %188 = arith.truncf %165 : vector<2x32xf32> to vector<2x32xbf16>
    %cst_56 = arith.constant dense<0.000000e+00> : vector<2x128xf32>
    %189 = tpu.matmul %188, %2, %cst_56 {dimension_numbers = #tpu.dot_dimension_numbers<[1], [0], [0], [1], [0, 0, 1, 1], [], []>} : vector<2x32xbf16>, vector<32x128xbf16>, vector<2x128xf32> -> vector<2x128xf32>
    %190 = arith.addf %30, %189 : vector<2x128xf32>
    %191 = arith.negf %190 : vector<2x128xf32>
    %192 = math.exp %191 : vector<2x128xf32>
    %cst_57 = arith.constant 1.000000e+00 : f32
    %193 = vector.broadcast %cst_57 : f32 to vector<2x128xf32>
    %194 = arith.addf %193, %192 : vector<2x128xf32>
    %195 = arith.divf %193, %194 : vector<2x128xf32>
    %196 = math.tanh %190 : vector<2x128xf32>
    %197 = vector.extract_strided_slice %195 {offsets = [0, 0], sizes = [2, 32], strides = [1, 1]} : vector<2x128xf32> to vector<2x32xf32>
    %198 = vector.extract_strided_slice %195 {offsets = [0, 32], sizes = [2, 32], strides = [1, 1]} : vector<2x128xf32> to vector<2x32xf32>
    %199 = vector.extract_strided_slice %196 {offsets = [0, 64], sizes = [2, 32], strides = [1, 1]} : vector<2x128xf32> to vector<2x32xf32>
    %200 = vector.extract_strided_slice %195 {offsets = [0, 96], sizes = [2, 32], strides = [1, 1]} : vector<2x128xf32> to vector<2x32xf32>
    %201 = arith.mulf %198, %163 : vector<2x32xf32>
    %202 = arith.mulf %197, %199 : vector<2x32xf32>
    %203 = arith.addf %201, %202 : vector<2x32xf32>
    %204 = math.tanh %203 : vector<2x32xf32>
    %205 = arith.mulf %200, %204 : vector<2x32xf32>
    %206 = arith.truncf %187 : vector<2x32xf32> to vector<2x32xbf16>
    %cst_58 = arith.constant dense<0.000000e+00> : vector<2x128xf32>
    %207 = tpu.matmul %206, %3, %cst_58 {dimension_numbers = #tpu.dot_dimension_numbers<[1], [0], [0], [1], [0, 0, 1, 1], [], []>} : vector<2x32xbf16>, vector<32x128xbf16>, vector<2x128xf32> -> vector<2x128xf32>
    %208 = vector.broadcast %5 : vector<1x128xf32> to vector<2x128xf32>
    %209 = arith.addf %208, %207 : vector<2x128xf32>
    %210 = arith.truncf %165 : vector<2x32xf32> to vector<2x32xbf16>
    %cst_59 = arith.constant dense<0.000000e+00> : vector<2x128xf32>
    %211 = tpu.matmul %210, %1, %cst_59 {dimension_numbers = #tpu.dot_dimension_numbers<[1], [0], [0], [1], [0, 0, 1, 1], [], []>} : vector<2x32xbf16>, vector<32x128xbf16>, vector<2x128xf32> -> vector<2x128xf32>
    %212 = arith.addf %209, %211 : vector<2x128xf32>
    %213 = arith.negf %212 : vector<2x128xf32>
    %214 = math.exp %213 : vector<2x128xf32>
    %cst_60 = arith.constant 1.000000e+00 : f32
    %215 = vector.broadcast %cst_60 : f32 to vector<2x128xf32>
    %216 = arith.addf %215, %214 : vector<2x128xf32>
    %217 = arith.divf %215, %216 : vector<2x128xf32>
    %218 = math.tanh %212 : vector<2x128xf32>
    %219 = vector.extract_strided_slice %217 {offsets = [0, 0], sizes = [2, 32], strides = [1, 1]} : vector<2x128xf32> to vector<2x32xf32>
    %220 = vector.extract_strided_slice %217 {offsets = [0, 32], sizes = [2, 32], strides = [1, 1]} : vector<2x128xf32> to vector<2x32xf32>
    %221 = vector.extract_strided_slice %218 {offsets = [0, 64], sizes = [2, 32], strides = [1, 1]} : vector<2x128xf32> to vector<2x32xf32>
    %222 = vector.extract_strided_slice %217 {offsets = [0, 96], sizes = [2, 32], strides = [1, 1]} : vector<2x128xf32> to vector<2x32xf32>
    %223 = arith.mulf %220, %185 : vector<2x32xf32>
    %224 = arith.mulf %219, %221 : vector<2x32xf32>
    %225 = arith.addf %223, %224 : vector<2x32xf32>
    %226 = math.tanh %225 : vector<2x32xf32>
    %227 = arith.mulf %222, %226 : vector<2x32xf32>
    %228 = arith.truncf %205 : vector<2x32xf32> to vector<2x32xbf16>
    %cst_61 = arith.constant dense<0.000000e+00> : vector<2x128xf32>
    %229 = tpu.matmul %228, %2, %cst_61 {dimension_numbers = #tpu.dot_dimension_numbers<[1], [0], [0], [1], [0, 0, 1, 1], [], []>} : vector<2x32xbf16>, vector<32x128xbf16>, vector<2x128xf32> -> vector<2x128xf32>
    %230 = arith.addf %35, %229 : vector<2x128xf32>
    %231 = arith.negf %230 : vector<2x128xf32>
    %232 = math.exp %231 : vector<2x128xf32>
    %cst_62 = arith.constant 1.000000e+00 : f32
    %233 = vector.broadcast %cst_62 : f32 to vector<2x128xf32>
    %234 = arith.addf %233, %232 : vector<2x128xf32>
    %235 = arith.divf %233, %234 : vector<2x128xf32>
    %236 = math.tanh %230 : vector<2x128xf32>
    %237 = vector.extract_strided_slice %235 {offsets = [0, 0], sizes = [2, 32], strides = [1, 1]} : vector<2x128xf32> to vector<2x32xf32>
    %238 = vector.extract_strided_slice %235 {offsets = [0, 32], sizes = [2, 32], strides = [1, 1]} : vector<2x128xf32> to vector<2x32xf32>
    %239 = vector.extract_strided_slice %236 {offsets = [0, 64], sizes = [2, 32], strides = [1, 1]} : vector<2x128xf32> to vector<2x32xf32>
    %240 = vector.extract_strided_slice %235 {offsets = [0, 96], sizes = [2, 32], strides = [1, 1]} : vector<2x128xf32> to vector<2x32xf32>
    %241 = arith.mulf %238, %203 : vector<2x32xf32>
    %242 = arith.mulf %237, %239 : vector<2x32xf32>
    %243 = arith.addf %241, %242 : vector<2x32xf32>
    %244 = math.tanh %243 : vector<2x32xf32>
    %245 = arith.mulf %240, %244 : vector<2x32xf32>
    %246 = arith.truncf %227 : vector<2x32xf32> to vector<2x32xbf16>
    %cst_63 = arith.constant dense<0.000000e+00> : vector<2x128xf32>
    %247 = tpu.matmul %246, %3, %cst_63 {dimension_numbers = #tpu.dot_dimension_numbers<[1], [0], [0], [1], [0, 0, 1, 1], [], []>} : vector<2x32xbf16>, vector<32x128xbf16>, vector<2x128xf32> -> vector<2x128xf32>
    %248 = vector.broadcast %5 : vector<1x128xf32> to vector<2x128xf32>
    %249 = arith.addf %248, %247 : vector<2x128xf32>
    %250 = arith.truncf %205 : vector<2x32xf32> to vector<2x32xbf16>
    %cst_64 = arith.constant dense<0.000000e+00> : vector<2x128xf32>
    %251 = tpu.matmul %250, %1, %cst_64 {dimension_numbers = #tpu.dot_dimension_numbers<[1], [0], [0], [1], [0, 0, 1, 1], [], []>} : vector<2x32xbf16>, vector<32x128xbf16>, vector<2x128xf32> -> vector<2x128xf32>
    %252 = arith.addf %249, %251 : vector<2x128xf32>
    %253 = arith.negf %252 : vector<2x128xf32>
    %254 = math.exp %253 : vector<2x128xf32>
    %cst_65 = arith.constant 1.000000e+00 : f32
    %255 = vector.broadcast %cst_65 : f32 to vector<2x128xf32>
    %256 = arith.addf %255, %254 : vector<2x128xf32>
    %257 = arith.divf %255, %256 : vector<2x128xf32>
    %258 = math.tanh %252 : vector<2x128xf32>
    %259 = vector.extract_strided_slice %257 {offsets = [0, 0], sizes = [2, 32], strides = [1, 1]} : vector<2x128xf32> to vector<2x32xf32>
    %260 = vector.extract_strided_slice %257 {offsets = [0, 32], sizes = [2, 32], strides = [1, 1]} : vector<2x128xf32> to vector<2x32xf32>
    %261 = vector.extract_strided_slice %258 {offsets = [0, 64], sizes = [2, 32], strides = [1, 1]} : vector<2x128xf32> to vector<2x32xf32>
    %262 = vector.extract_strided_slice %257 {offsets = [0, 96], sizes = [2, 32], strides = [1, 1]} : vector<2x128xf32> to vector<2x32xf32>
    %263 = arith.mulf %260, %225 : vector<2x32xf32>
    %264 = arith.mulf %259, %261 : vector<2x32xf32>
    %265 = arith.addf %263, %264 : vector<2x32xf32>
    %266 = math.tanh %265 : vector<2x32xf32>
    %267 = arith.mulf %262, %266 : vector<2x32xf32>
    %268 = arith.truncf %245 : vector<2x32xf32> to vector<2x32xbf16>
    %cst_66 = arith.constant dense<0.000000e+00> : vector<2x128xf32>
    %269 = tpu.matmul %268, %2, %cst_66 {dimension_numbers = #tpu.dot_dimension_numbers<[1], [0], [0], [1], [0, 0, 1, 1], [], []>} : vector<2x32xbf16>, vector<32x128xbf16>, vector<2x128xf32> -> vector<2x128xf32>
    %270 = arith.addf %40, %269 : vector<2x128xf32>
    %271 = arith.negf %270 : vector<2x128xf32>
    %272 = math.exp %271 : vector<2x128xf32>
    %cst_67 = arith.constant 1.000000e+00 : f32
    %273 = vector.broadcast %cst_67 : f32 to vector<2x128xf32>
    %274 = arith.addf %273, %272 : vector<2x128xf32>
    %275 = arith.divf %273, %274 : vector<2x128xf32>
    %276 = math.tanh %270 : vector<2x128xf32>
    %277 = vector.extract_strided_slice %275 {offsets = [0, 0], sizes = [2, 32], strides = [1, 1]} : vector<2x128xf32> to vector<2x32xf32>
    %278 = vector.extract_strided_slice %275 {offsets = [0, 32], sizes = [2, 32], strides = [1, 1]} : vector<2x128xf32> to vector<2x32xf32>
    %279 = vector.extract_strided_slice %276 {offsets = [0, 64], sizes = [2, 32], strides = [1, 1]} : vector<2x128xf32> to vector<2x32xf32>
    %280 = vector.extract_strided_slice %275 {offsets = [0, 96], sizes = [2, 32], strides = [1, 1]} : vector<2x128xf32> to vector<2x32xf32>
    %281 = arith.mulf %278, %243 : vector<2x32xf32>
    %282 = arith.mulf %277, %279 : vector<2x32xf32>
    %283 = arith.addf %281, %282 : vector<2x32xf32>
    %284 = math.tanh %283 : vector<2x32xf32>
    %285 = arith.mulf %280, %284 : vector<2x32xf32>
    %286 = arith.truncf %267 : vector<2x32xf32> to vector<2x32xbf16>
    %cst_68 = arith.constant dense<0.000000e+00> : vector<2x128xf32>
    %287 = tpu.matmul %286, %3, %cst_68 {dimension_numbers = #tpu.dot_dimension_numbers<[1], [0], [0], [1], [0, 0, 1, 1], [], []>} : vector<2x32xbf16>, vector<32x128xbf16>, vector<2x128xf32> -> vector<2x128xf32>
    %288 = vector.broadcast %5 : vector<1x128xf32> to vector<2x128xf32>
    %289 = arith.addf %288, %287 : vector<2x128xf32>
    %290 = arith.truncf %245 : vector<2x32xf32> to vector<2x32xbf16>
    %cst_69 = arith.constant dense<0.000000e+00> : vector<2x128xf32>
    %291 = tpu.matmul %290, %1, %cst_69 {dimension_numbers = #tpu.dot_dimension_numbers<[1], [0], [0], [1], [0, 0, 1, 1], [], []>} : vector<2x32xbf16>, vector<32x128xbf16>, vector<2x128xf32> -> vector<2x128xf32>
    %292 = arith.addf %289, %291 : vector<2x128xf32>
    %293 = arith.negf %292 : vector<2x128xf32>
    %294 = math.exp %293 : vector<2x128xf32>
    %cst_70 = arith.constant 1.000000e+00 : f32
    %295 = vector.broadcast %cst_70 : f32 to vector<2x128xf32>
    %296 = arith.addf %295, %294 : vector<2x128xf32>
    %297 = arith.divf %295, %296 : vector<2x128xf32>
    %298 = math.tanh %292 : vector<2x128xf32>
    %299 = vector.extract_strided_slice %297 {offsets = [0, 0], sizes = [2, 32], strides = [1, 1]} : vector<2x128xf32> to vector<2x32xf32>
    %300 = vector.extract_strided_slice %297 {offsets = [0, 32], sizes = [2, 32], strides = [1, 1]} : vector<2x128xf32> to vector<2x32xf32>
    %301 = vector.extract_strided_slice %298 {offsets = [0, 64], sizes = [2, 32], strides = [1, 1]} : vector<2x128xf32> to vector<2x32xf32>
    %302 = vector.extract_strided_slice %297 {offsets = [0, 96], sizes = [2, 32], strides = [1, 1]} : vector<2x128xf32> to vector<2x32xf32>
    %303 = arith.mulf %300, %265 : vector<2x32xf32>
    %304 = arith.mulf %299, %301 : vector<2x32xf32>
    %305 = arith.addf %303, %304 : vector<2x32xf32>
    %306 = math.tanh %305 : vector<2x32xf32>
    %307 = arith.mulf %302, %306 : vector<2x32xf32>
    %308 = arith.truncf %285 : vector<2x32xf32> to vector<2x32xbf16>
    %cst_71 = arith.constant dense<0.000000e+00> : vector<2x128xf32>
    %309 = tpu.matmul %308, %2, %cst_71 {dimension_numbers = #tpu.dot_dimension_numbers<[1], [0], [0], [1], [0, 0, 1, 1], [], []>} : vector<2x32xbf16>, vector<32x128xbf16>, vector<2x128xf32> -> vector<2x128xf32>
    %310 = arith.addf %45, %309 : vector<2x128xf32>
    %311 = arith.negf %310 : vector<2x128xf32>
    %312 = math.exp %311 : vector<2x128xf32>
    %cst_72 = arith.constant 1.000000e+00 : f32
    %313 = vector.broadcast %cst_72 : f32 to vector<2x128xf32>
    %314 = arith.addf %313, %312 : vector<2x128xf32>
    %315 = arith.divf %313, %314 : vector<2x128xf32>
    %316 = math.tanh %310 : vector<2x128xf32>
    %317 = vector.extract_strided_slice %315 {offsets = [0, 0], sizes = [2, 32], strides = [1, 1]} : vector<2x128xf32> to vector<2x32xf32>
    %318 = vector.extract_strided_slice %315 {offsets = [0, 32], sizes = [2, 32], strides = [1, 1]} : vector<2x128xf32> to vector<2x32xf32>
    %319 = vector.extract_strided_slice %316 {offsets = [0, 64], sizes = [2, 32], strides = [1, 1]} : vector<2x128xf32> to vector<2x32xf32>
    %320 = vector.extract_strided_slice %315 {offsets = [0, 96], sizes = [2, 32], strides = [1, 1]} : vector<2x128xf32> to vector<2x32xf32>
    %321 = arith.mulf %318, %283 : vector<2x32xf32>
    %322 = arith.mulf %317, %319 : vector<2x32xf32>
    %323 = arith.addf %321, %322 : vector<2x32xf32>
    %324 = math.tanh %323 : vector<2x32xf32>
    %325 = arith.mulf %320, %324 : vector<2x32xf32>
    %326 = arith.truncf %307 : vector<2x32xf32> to vector<2x32xbf16>
    %cst_73 = arith.constant dense<0.000000e+00> : vector<2x128xf32>
    %327 = tpu.matmul %326, %3, %cst_73 {dimension_numbers = #tpu.dot_dimension_numbers<[1], [0], [0], [1], [0, 0, 1, 1], [], []>} : vector<2x32xbf16>, vector<32x128xbf16>, vector<2x128xf32> -> vector<2x128xf32>
    %328 = vector.broadcast %5 : vector<1x128xf32> to vector<2x128xf32>
    %329 = arith.addf %328, %327 : vector<2x128xf32>
    %330 = arith.truncf %285 : vector<2x32xf32> to vector<2x32xbf16>
    %cst_74 = arith.constant dense<0.000000e+00> : vector<2x128xf32>
    %331 = tpu.matmul %330, %1, %cst_74 {dimension_numbers = #tpu.dot_dimension_numbers<[1], [0], [0], [1], [0, 0, 1, 1], [], []>} : vector<2x32xbf16>, vector<32x128xbf16>, vector<2x128xf32> -> vector<2x128xf32>
    %332 = arith.addf %329, %331 : vector<2x128xf32>
    %333 = arith.negf %332 : vector<2x128xf32>
    %334 = math.exp %333 : vector<2x128xf32>
    %cst_75 = arith.constant 1.000000e+00 : f32
    %335 = vector.broadcast %cst_75 : f32 to vector<2x128xf32>
    %336 = arith.addf %335, %334 : vector<2x128xf32>
    %337 = arith.divf %335, %336 : vector<2x128xf32>
    %338 = math.tanh %332 : vector<2x128xf32>
    %339 = vector.extract_strided_slice %337 {offsets = [0, 0], sizes = [2, 32], strides = [1, 1]} : vector<2x128xf32> to vector<2x32xf32>
    %340 = vector.extract_strided_slice %337 {offsets = [0, 32], sizes = [2, 32], strides = [1, 1]} : vector<2x128xf32> to vector<2x32xf32>
    %341 = vector.extract_strided_slice %338 {offsets = [0, 64], sizes = [2, 32], strides = [1, 1]} : vector<2x128xf32> to vector<2x32xf32>
    %342 = vector.extract_strided_slice %337 {offsets = [0, 96], sizes = [2, 32], strides = [1, 1]} : vector<2x128xf32> to vector<2x32xf32>
    %343 = arith.mulf %340, %305 : vector<2x32xf32>
    %344 = arith.mulf %339, %341 : vector<2x32xf32>
    %345 = arith.addf %343, %344 : vector<2x32xf32>
    %346 = math.tanh %345 : vector<2x32xf32>
    %347 = arith.mulf %342, %346 : vector<2x32xf32>
    %348 = arith.truncf %347 : vector<2x32xf32> to vector<2x32xbf16>
    %cst_76 = arith.constant dense<0.000000e+00> : vector<2x128xf32>
    %349 = tpu.matmul %348, %3, %cst_76 {dimension_numbers = #tpu.dot_dimension_numbers<[1], [0], [0], [1], [0, 0, 1, 1], [], []>} : vector<2x32xbf16>, vector<32x128xbf16>, vector<2x128xf32> -> vector<2x128xf32>
    %350 = vector.broadcast %5 : vector<1x128xf32> to vector<2x128xf32>
    %351 = arith.addf %350, %349 : vector<2x128xf32>
    %352 = arith.truncf %325 : vector<2x32xf32> to vector<2x32xbf16>
    %cst_77 = arith.constant dense<0.000000e+00> : vector<2x128xf32>
    %353 = tpu.matmul %352, %1, %cst_77 {dimension_numbers = #tpu.dot_dimension_numbers<[1], [0], [0], [1], [0, 0, 1, 1], [], []>} : vector<2x32xbf16>, vector<32x128xbf16>, vector<2x128xf32> -> vector<2x128xf32>
    %354 = arith.addf %351, %353 : vector<2x128xf32>
    %355 = arith.negf %354 : vector<2x128xf32>
    %356 = math.exp %355 : vector<2x128xf32>
    %cst_78 = arith.constant 1.000000e+00 : f32
    %357 = vector.broadcast %cst_78 : f32 to vector<2x128xf32>
    %358 = arith.addf %357, %356 : vector<2x128xf32>
    %359 = arith.divf %357, %358 : vector<2x128xf32>
    %360 = math.tanh %354 : vector<2x128xf32>
    %361 = vector.extract_strided_slice %359 {offsets = [0, 0], sizes = [2, 32], strides = [1, 1]} : vector<2x128xf32> to vector<2x32xf32>
    %362 = vector.extract_strided_slice %359 {offsets = [0, 32], sizes = [2, 32], strides = [1, 1]} : vector<2x128xf32> to vector<2x32xf32>
    %363 = vector.extract_strided_slice %360 {offsets = [0, 64], sizes = [2, 32], strides = [1, 1]} : vector<2x128xf32> to vector<2x32xf32>
    %364 = vector.extract_strided_slice %359 {offsets = [0, 96], sizes = [2, 32], strides = [1, 1]} : vector<2x128xf32> to vector<2x32xf32>
    %365 = arith.mulf %362, %345 : vector<2x32xf32>
    %366 = arith.mulf %361, %363 : vector<2x32xf32>
    %367 = arith.addf %365, %366 : vector<2x32xf32>
    %368 = math.tanh %367 : vector<2x32xf32>
    %369 = arith.mulf %364, %368 : vector<2x32xf32>
    %370 = arith.truncf %369 : vector<2x32xf32> to vector<2x32xbf16>
    %c0_79 = arith.constant 0 : index
    %c0_80 = arith.constant 0 : index
    %371 = vector.load %arg7[%c0_79, %c0_80] : memref<32x1xbf16, #tpu.memory_space<vmem>>, vector<32x1xbf16>
    %cst_81 = arith.constant dense<0.000000e+00> : vector<2x1xf32>
    %372 = tpu.matmul %370, %371, %cst_81 {dimension_numbers = #tpu.dot_dimension_numbers<[1], [0], [0], [1], [0, 0, 1, 1], [], []>} : vector<2x32xbf16>, vector<32x1xbf16>, vector<2x1xf32> -> vector<2x1xf32>
    %c0_82 = arith.constant 0 : index
    %c0_83 = arith.constant 0 : index
    %373 = vector.load %arg8[%c0_82, %c0_83] : memref<1x1xf32, #tpu.memory_space<vmem>>, vector<1x1xf32>
    %374 = vector.broadcast %373 : vector<1x1xf32> to vector<2x1xf32>
    %375 = arith.addf %372, %374 : vector<2x1xf32>
    %c0_84 = arith.constant 0 : index
    %c0_85 = arith.constant 0 : index
    %376 = vector.load %arg9[%c0_84, %c0_85] : memref<2x1xf32, #tpu.memory_space<vmem>>, vector<2x1xf32>
    tpu.vector_store %arg9[%c0_84, %c0_85], %375 {strides = array<i32>} : memref<2x1xf32, #tpu.memory_space<vmem>>, vector<2x1xf32>,
    return
  }
}

</mosaic_0001>

<bundles_post_ra>
// kernel: lstm_regressor_forward.1
= control target key start
LH: loop header
LB: loop body
LE: loop exit
PB: predicated region body
PF: predicated region fallthrough
CT: control target
= control target key end

     0   :  { %v2571_v0 = vmov 0.0   ;;  %vm2572_vm0 = vmmov 0   ;;  %vm64_vm1 = vcmask 130048   ;;  %v2573_v8 = vmov 0   ;;  %s2574_s24 = smov 64   ;;  %s2575_s25 = smov 32   ;;  %s3080_s1 = inlined_call_operand.vmem [shape: bf16[16,128], index: 1, kind: input, shape index: {}]   ;;  %s3081_s0 = inlined_call_operand.vmem [shape: bf16[8,2,16], index: 0, kind: input, shape index: {}]   ;;  %s3082_s2 = inlined_call_operand.vmem [shape: bf16[32,128], index: 2, kind: input, shape index: {}]   ;;  %s3083_s3 = inlined_call_operand.vmem [shape: f32[1,128], index: 3, kind: input, shape index: {}]   ;;  %s3084_s5 = inlined_call_operand.vmem [shape: bf16[32,128], index: 5, kind: input, shape index: {}]   ;;  %s3085_s4 = inlined_call_operand.vmem [shape: bf16[32,128], index: 4, kind: input, shape index: {}]   ;;  %s3086_s6 = inlined_call_operand.vmem [shape: f32[1,128], index: 6, kind: input, shape index: {}]   ;;  %s3087_s7 = inlined_call_operand.vmem [shape: bf16[32,1], index: 7, kind: input, shape index: {}]   ;;  %s3088_s8 = inlined_call_operand.<no memory space> [shape: f32[1,1], index: 8, kind: input, shape index: {}]   ;;  %s3089_s9 = inlined_call_operand.vmem [shape: f32[2,1], index: 9, kind: output, shape index: {}]  }
   0x1   :  { %2175 = vmatprep.subr.bf16.mxu0 %v2571_v0  ;;  %v2630_v1 = vld [vmem:[%s3080_s1] sm:$0xff]   ;;  %2177 = vmatprep.mubr.msk.bf16.mxu0 %vm2572_vm0, %v2571_v0  ;;  %v2671_v6 = vld [vmem:[%s3082_s2 + $0x8] sm:$0xff]   ;;  %vm435_vm2 = vcmask 261120   ;;  %vm2012_vm3 = vcmask 1024  }
   0x2   :  { %2181 = vmatprep.subr.bf16.mxu1 %v2571_v0  ;;  %2183 = vmatprep.mubr.msk.bf16.mxu1 %vm2572_vm0, %v2571_v0  ;;  %v51_v2 = vld [vmem:[%s3081_s0] sm:$0x1]  ;;  %v2023_v3 = vld [vmem:[%s3081_s0 + $0x2] sm:$0x1]  ;;  %v2027_v4 = vld [vmem:[%s3081_s0 + $0x4] sm:$0x1] }
   0x3   :  { %2176 = vmatpush3.bf16.msra.mxu0 %v2630_v1  ;;  %2182 = vmatpush3.bf16.msra.mxu1 %v2630_v1  ;;  %v2031_v5 = vld [vmem:[%s3081_s0 + $0x6] sm:$0x1]  ;;  %v2696_v23 = vld [vmem:[%s3083_s3] ss:$0 sm:$0xff]  ;;  %v2021_v42 = vld [vmem:[%s3081_s0 + $0x1] sm:$0x1] }
   0x4   :  { %2187 = vmatprep.subr.bf16.mxu0 %v2571_v0  ;;  %2193 = vmatprep.subr.bf16.mxu1 %v2571_v0  ;;  %v2678_v7 = vld [vmem:[%s3082_s2] sm:$0xff]   ;;  %v2714_v43 = vld [vmem:[%s3084_s5 + $0x8] sm:$0xff]  }
   0x5   :  { %v2721_v44 = vld [vmem:[%s3084_s5] sm:$0xff]  }
   0x6   :  { %2178 = vmatmul.mubr.msk.bf16.vlgmr.msra.gmra.mxu0 %vm64_vm1, %v51_v2  ;;  %2184 = vmatmul.mubr.msk.bf16.vlgmr.msra.gmra.mxu1 %vm64_vm1, %v2021_v42  ;;  %v2025_v45 = vld [vmem:[%s3081_s0 + $0x3] sm:$0x1]  ;;  %v2029_v47 = vld [vmem:[%s3081_s0 + $0x5] sm:$0x1]  ;;  %v2033_v48 = vld [vmem:[%s3081_s0 + $0x7] sm:$0x1] }
   0x7   :  { %2188 = vmatpush3.bf16.msra.mxu0 %v2630_v1  ;;  %2189 = vmatprep.mubr.msk.bf16.mxu0 %vm2572_vm0, %v2571_v0 }
   0x8   :  { %2199 = vmatprep.subr.bf16.mxu0 %v2571_v0  ;;  %2194 = vmatpush3.bf16.msra.mxu1 %v2630_v1 }
   0x9   :  { %2195 = vmatprep.mubr.msk.bf16.mxu1 %vm2572_vm0, %v2571_v0  ;;  %2205 = vmatprep.subr.bf16.mxu1 %v2571_v0 }
   0xe   :  { %2190 = vmatmul.mubr.msk.bf16.vlgmr.msra.gmra.mxu0 %vm64_vm1, %v2023_v3  ;;  %2196 = vmatmul.mubr.msk.bf16.vlgmr.msra.gmra.mxu1 %vm64_vm1, %v2025_v45 }
   0xf   :  { %2200 = vmatpush3.bf16.msra.mxu0 %v2630_v1  ;;  %2201 = vmatprep.mubr.msk.bf16.mxu0 %vm2572_vm0, %v2571_v0 }
  0x10   :  { %2211 = vmatprep.subr.bf16.mxu0 %v2571_v0  ;;  %2206 = vmatpush3.bf16.msra.mxu1 %v2630_v1 }
  0x11   :  { %2207 = vmatprep.mubr.msk.bf16.mxu1 %vm2572_vm0, %v2571_v0  ;;  %2217 = vmatprep.subr.bf16.mxu1 %v2571_v0 }
  0x16   :  { %2202 = vmatmul.mubr.msk.bf16.vlgmr.msra.gmra.mxu0 %vm64_vm1, %v2027_v4  ;;  %2208 = vmatmul.mubr.msk.bf16.vlgmr.msra.gmra.mxu1 %vm64_vm1, %v2029_v47 }
  0x17   :  { %2212 = vmatpush3.bf16.msra.mxu0 %v2630_v1  ;;  %2213 = vmatprep.mubr.msk.bf16.mxu0 %vm2572_vm0, %v2571_v0 }
  0x18   :  { %2223 = vmatprep.subr.bf16.mxu0 %v2571_v0  ;;  %2218 = vmatpush3.bf16.msra.mxu1 %v2630_v1 }
  0x19   :  { %2219 = vmatprep.mubr.msk.bf16.mxu1 %vm2572_vm0, %v2571_v0  ;;  %2231 = vmatprep.subr.bf16.mxu1 %v2571_v0 }
  0x1e   :  { %2214 = vmatmul.mubr.msk.bf16.vlgmr.msra.gmra.mxu0 %vm64_vm1, %v2031_v5  ;;  %2220 = vmatmul.mubr.msk.bf16.vlgmr.msra.gmra.mxu1 %vm64_vm1, %v2033_v48  ;;  %v2769_v5 = vld [vmem:[%s3085_s4 + $0x8] sm:$0xff]  }
  0x1f   :  { %2224 = vmatpush3.bf16.msra.mxu0 %v2671_v6  ;;  %2227 = vmatprep.mubr.msk.bf16.mxu0 %vm2572_vm0, %v2571_v0 }
  0x20   :  { %2225 = vmatprep.subr.bf16.mxu0 %v2571_v0  ;;  %2232 = vmatpush3.bf16.msra.mxu1 %v2671_v6 }
  0x21   :  { %2235 = vmatprep.mubr.msk.bf16.mxu1 %vm2572_vm0, %v2571_v0  ;;  %2233 = vmatprep.subr.bf16.mxu1 %v2571_v0 }
  0x23   :  { %2226 = vmatpush3.bf16.msra.mxu0 %v2678_v7 }
  0x24   :  { %2239 = vmatprep.subr.bf16.mxu0 %v2571_v0  ;;  %2234 = vmatpush3.bf16.msra.mxu1 %v2678_v7 }
  0x25   :  { %2247 = vmatprep.subr.bf16.mxu1 %v2571_v0 }
  0x26   :  { %2228 = vmatmul.mubr.bf16.vlgmr.msra.gmra.mxu0 %v2573_v8 }
  0x27   :  { %2243 = vmatprep.mubr.msk.bf16.mxu0 %vm2572_vm0, %v2571_v0  ;;  %2240 = vmatpush3.bf16.msra.mxu0 %v2714_v43 }
  0x28   :  { %2241 = vmatprep.subr.bf16.mxu0 %v2571_v0 }
  0x2b   :  { %2242 = vmatpush3.bf16.msra.mxu0 %v2721_v44 }
  0x2c   :  { %2255 = vmatprep.subr.bf16.mxu0 %v2571_v0 }
  0x2e   :  { %2244 = vmatmul.mubr.bf16.vlgmr.msra.gmra.mxu0 %v2573_v8 }
  0x2f   :  { %2259 = vmatprep.mubr.msk.bf16.mxu0 %vm2572_vm0, %v2571_v0  ;;  %2256 = vmatpush3.bf16.msra.mxu0 %v2671_v6 }
  0x30   :  { %2257 = vmatprep.subr.bf16.mxu0 %v2571_v0 }
  0x33   :  { %2258 = vmatpush3.bf16.msra.mxu0 %v2678_v7 }
  0x34   :  { %2271 = vmatprep.subr.bf16.mxu0 %v2571_v0 }
  0xc6   :  { %v102_v9 = vpop.f32.mrf.mxu0  ;;  %v147_v52 = vpop.f32.mrf.mxu1 }
  0xc7   :  { %v103_v26 = vadd.f32 %v2696_v23, %v102_v9  ;;  %v2776_v9 = vld [vmem:[%s3085_s4] sm:$0xff]  }
  0xc8   :  { %v2179_v10 = vpop.f32.mrf.mxu0  ;;  %v2185_v53 = vpop.f32.mrf.mxu1 }
  0xca   :  { %v105_v11 = vpop.f32.mrf.mxu0  ;;  %v150_v54 = vpop.f32.mrf.mxu1 }
  0xcc   :  { %v2180_v12 = vpop.f32.mrf.mxu0  ;;  %v2186_v55 = vpop.f32.mrf.mxu1 }
  0xce   :  { %v2687_v13 = vpop.f32.mrf.mxu0  ;;  %v2760_v56 = vpop.f32.mrf.mxu1 }
  0xd0   :  { %v2191_v14 = vpop.f32.mrf.mxu0  ;;  %v2197_v57 = vpop.f32.mrf.mxu1 }
  0xd2   :  { %v195_v15 = vpop.f32.mrf.mxu0  ;;  %v240_v58 = vpop.f32.mrf.mxu1 }
  0xd3   :  { %v148_v15 = vadd.f32 %v2696_v23, %v147_v52 }
  0xd4   :  { %v2192_v16 = vpop.f32.mrf.mxu0  ;;  %v2198_v59 = vpop.f32.mrf.mxu1 }
  0xd6   :  { %v2689_v17 = vpop.f32.mrf.mxu0  ;;  %v2762_v60 = vpop.f32.mrf.mxu1 }
  0xd8   :  { %v2203_v18 = vpop.f32.mrf.mxu0  ;;  %v2209_v61 = vpop.f32.mrf.mxu1 }
  0xda   :  { %v285_v19 = vpop.f32.mrf.mxu0  ;;  %v330_v62 = vpop.f32.mrf.mxu1 }
  0xdb   :  { %v2794_v19 = vld [vmem:[%s3086_s6] ss:$0 sm:$0xff] }
  0xdc   :  { %v2204_v20 = vpop.f32.mrf.mxu0  ;;  %v2210_v63 = vpop.f32.mrf.mxu1 }
  0xde   :  { %v2691_v21 = vpop.f32.mrf.mxu0  ;;  %v2764_v1 = vpop.f32.mrf.mxu1 }
  0xe0   :  { %v2215_v22 = vpop.f32.mrf.mxu0  ;;  %v2221_v2 = vpop.f32.mrf.mxu1 }
  0xe2   :  { %v375_v24 = vpop.f32.mrf.mxu0  ;;  %v420_v3 = vpop.f32.mrf.mxu1 }
  0xe3   :  { %v193_v3 = vadd.f32 %v2696_v23, %v2687_v13 }
  0xe4   :  { %v2216_v25 = vpop.f32.mrf.mxu0  ;;  %v2222_v4 = vpop.f32.mrf.mxu1 }
  0xe6   :  { %v473_v27 = vpop.f32.mrf.mxu0 }
  0xe7   :  { %v479_v28 = vadd.f32 %v473_v27, %v103_v26 }
  0xe8   :  { %v2229_v29 = vpop.f32.mrf.mxu0 }
  0xe9   :  { %2437 = vtanh.f32 %v479_v28  ;;  %v2037_v33 = vmul.f32 -1.442695, %v479_v28 }
  0xea   :  { %v476_v30 = vpop.f32.mrf.mxu0 }
  0xeb   :  { %2439 = vpow2.f32 %v2037_v33 }
  0xec   :  { %v2230_v31 = vpop.f32.mrf.mxu0 }
  0xee   :  { %v622_v10 = vpop.f32.mrf.mxu0 }
  0xef   :  { %v634_v24 = vadd.f32 %v2794_v19, %v622_v10 }
  0xf0   :  { %v2245_v11 = vpop.f32.mrf.mxu0 }
  0xf2   :  { %v625_v12 = vpop.f32.mrf.mxu0 }
  0xf4   :  { %v2246_v14 = vpop.f32.mrf.mxu0 }
  0xf6   :  { %v2438_v32 = vpop.eup %2437 }
  0xf7   :  { %489 = vrot.lane.b32.xlu0 %v2438_v32, %s2574_s24 }
  0xf8   :  { %v2440_v34 = vpop.eup %2439 }
  0xf9   :  { %v483_v35 = vadd.f32 1.0, %v2440_v34 }
  0xfb   :  { %2441 = vrcp.f32 %v483_v35 }
 0x108   :  { %v2442_v36 = vpop.eup %2441 }
 0x109   :  { %v487_v39 = vmul.f32 0.0, %v2442_v36 }
 0x169   :  { %v490_v37 = vpop.permute.xlu0 %489 }
 0x16a   :  { %v492_v38 = vmul.f32 %v2442_v36, %v490_v37 }
 0x16c   :  { %494 = vrot.lane.b32.xlu0 %v492_v38, %s2575_s25 }
 0x1de   :  { %v495_v40 = vpop.permute.xlu0 %494 }
 0x1df   :  { %v2701_v41 = vadd.f32 %v495_v40, %v487_v39 }
 0x1e1   :  { %2443 = vtanh.f32 %v2701_v41 }
 0x1ee   :  { %v2444_v46 = vpop.eup %2443 }
 0x1ef   :  { %500 = vrot.lane.b32.xlu1 %v2444_v46, %s2574_s24 }
 0x261   :  { %v501_v49 = vpop.permute.xlu1 %500 }
 0x262   :  { %v503_v50 = vmul.f32 %v2442_v36, %v501_v49 }
 0x264   :  { %v504_v51 = vpack.c.bf16 %v503_v50, %v503_v50 }
 0x266   :  { %506 = vrot.lane.b32.xlu1 %v504_v51, %s2575_s25 }
 0x2d8   :  { %v507_v8 = vpop.permute.xlu1 %506 }
 0x2d9   :  { %2236 = vmatmul.mubr.msk.bf16.vlgmr.msra.gmra.mxu1 %vm435_vm2, %v507_v8 }
 0x2da   :  { %2248 = vmatpush3.bf16.msra.mxu1 %v2769_v5  ;;  %2251 = vmatprep.mubr.msk.bf16.mxu1 %vm2572_vm0, %v2571_v0 }
 0x2db   :  { %2249 = vmatprep.subr.bf16.mxu1 %v2571_v0 }
 0x2de   :  { %2250 = vmatpush3.bf16.msra.mxu1 %v2776_v9 }
 0x2df   :  { %2263 = vmatprep.subr.bf16.mxu1 %v2571_v0 }
 0x2e1   :  { %2252 = vmatmul.mubr.msk.bf16.vlgmr.msra.gmra.mxu1 %vm435_vm2, %v507_v8 }
 0x2e2   :  { %2264 = vmatpush3.bf16.msra.mxu1 %v2714_v43  ;;  %2267 = vmatprep.mubr.msk.bf16.mxu1 %vm2572_vm0, %v2571_v0 }
 0x2e3   :  { %2265 = vmatprep.subr.bf16.mxu1 %v2571_v0 }
 0x2e6   :  { %2266 = vmatpush3.bf16.msra.mxu1 %v2721_v44 }
 0x2e7   :  { %2279 = vmatprep.subr.bf16.mxu1 %v2571_v0 }
 0x399   :  { %v545_v16 = vpop.f32.mrf.mxu1 }
 0x39a   :  { %v551_v18 = vadd.f32 %v545_v16, %v148_v15 }
 0x39b   :  { %v2237_v20 = vpop.f32.mrf.mxu1 }
 0x39c   :  { %2445 = vtanh.f32 %v551_v18  ;;  %v2039_v33 = vmul.f32 -1.442695, %v551_v18 }
 0x39d   :  { %v548_v22 = vpop.f32.mrf.mxu1 }
 0x39f   :  { %v2238_v25 = vpop.f32.mrf.mxu1 }
 0x3a1   :  { %v681_v26 = vpop.f32.mrf.mxu1 }
 0x3a2   :  { %v687_v27 = vadd.f32 %v681_v26, %v634_v24 }
 0x3a3   :  { %v2253_v28 = vpop.f32.mrf.mxu1 }
 0x3a4   :  { %2447 = vtanh.f32 %v687_v27  ;;  %v2046_v34 = vmul.f32 -1.442695, %v687_v27 }
 0x3a5   :  { %v684_v29 = vpop.f32.mrf.mxu1  ;;  %2449 = vpow2.f32 %v2039_v33 }
 0x3a6   :  { %2451 = vpow2.f32 %v2046_v34 }
 0x3a7   :  { %v2254_v30 = vpop.f32.mrf.mxu1 }
 0x3a9   :  { %v2446_v31 = vpop.eup %2445 }
 0x3aa   :  { %561 = vrot.lane.b32.xlu0 %v2446_v31, %s2574_s24 }
 0x3b1   :  { %v2448_v32 = vpop.eup %2447 }
 0x3b2   :  { %697 = vrot.lane.b32.xlu1 %v2448_v32, %s2574_s24  ;;  %v2450_v35 = vpop.eup %2449 }
 0x3b3   :  { %v555_v36 = vadd.f32 1.0, %v2450_v35  ;;  %v2452_v37 = vpop.eup %2451 }
 0x3b4   :  { %v691_v38 = vadd.f32 1.0, %v2452_v37 }
 0x3b5   :  { %2453 = vrcp.f32 %v555_v36 }
 0x3b6   :  { %2455 = vrcp.f32 %v691_v38 }
 0x3c2   :  { %v2454_v39 = vpop.eup %2453 }
 0x3c3   :  { %v2456_v45 = vpop.eup %2455  ;;  %v559_v48 = vmul.f32 %v2454_v39, %v2701_v41 }
 0x3c4   :  { %v695_v51 = vmul.f32 0.0, %v2456_v45 }
 0x41c   :  { %v562_v40 = vpop.permute.xlu0 %561 }
 0x41d   :  { %v564_v42 = vmul.f32 %v2454_v39, %v562_v40 }
 0x41f   :  { %566 = vrot.lane.b32.xlu0 %v564_v42, %s2575_s25 }
 0x424   :  { %v698_v46 = vpop.permute.xlu1 %697 }
 0x425   :  { %v700_v47 = vmul.f32 %v2456_v45, %v698_v46 }
 0x427   :  { %702 = vrot.lane.b32.xlu1 %v700_v47, %s2575_s25 }
 0x491   :  { %v567_v49 = vpop.permute.xlu0 %566 }
 0x492   :  { %v2802_v50 = vadd.f32 %v567_v49, %v559_v48 }
 0x494   :  { %2457 = vtanh.f32 %v2802_v50 }
 0x499   :  { %v703_v52 = vpop.permute.xlu1 %702 }
 0x49a   :  { %v2805_v53 = vadd.f32 %v703_v52, %v695_v51 }
 0x49c   :  { %2459 = vtanh.f32 %v2805_v53 }
 0x4a1   :  { %v2458_v54 = vpop.eup %2457 }
 0x4a2   :  { %572 = vrot.lane.b32.xlu0 %v2458_v54, %s2574_s24 }
 0x4a9   :  { %v2460_v55 = vpop.eup %2459 }
 0x4aa   :  { %708 = vrot.lane.b32.xlu1 %v2460_v55, %s2574_s24 }
 0x514   :  { %v573_v57 = vpop.permute.xlu0 %572 }
 0x515   :  { %v575_v58 = vmul.f32 %v2454_v39, %v573_v57 }
 0x517   :  { %v712_v41 = vpack.c.bf16 %v575_v58, %v575_v58 }
 0x519   :  { %714 = vrot.lane.b32.xlu0 %v712_v41, %s2575_s25 }
 0x51c   :  { %v709_v59 = vpop.permute.xlu1 %708 }
 0x51d   :  { %v711_v61 = vmul.f32 %v2456_v45, %v709_v59 }
 0x51f   :  { %v784_v62 = vpack.c.bf16 %v711_v61, %v711_v61  ;;  %v238_v61 = vadd.f32 %v2696_v23, %v2760_v56 }
 0x521   :  { %786 = vrot.lane.b32.xlu1 %v784_v62, %s2575_s25 }
 0x58b   :  { %v715_v63 = vpop.permute.xlu0 %714 }
 0x58c   :  { %2260 = vmatmul.mubr.msk.bf16.vlgmr.msra.gmra.mxu0 %vm435_vm2, %v715_v63 }
 0x58d   :  { %2272 = vmatpush3.bf16.msra.mxu0 %v2769_v5  ;;  %2275 = vmatprep.mubr.msk.bf16.mxu0 %vm2572_vm0, %v2571_v0 }
 0x58e   :  { %2273 = vmatprep.subr.bf16.mxu0 %v2571_v0 }
 0x591   :  { %2274 = vmatpush3.bf16.msra.mxu0 %v2776_v9 }
 0x592   :  { %2287 = vmatprep.subr.bf16.mxu0 %v2571_v0 }
 0x593   :  { %v787_v2 = vpop.permute.xlu1 %786 }
 0x594   :  { %2268 = vmatmul.mubr.msk.bf16.vlgmr.msra.gmra.mxu1 %vm435_vm2, %v787_v2  ;;  %2276 = vmatmul.mubr.msk.bf16.vlgmr.msra.gmra.mxu0 %vm435_vm2, %v715_v63 }
 0x595   :  { %2280 = vmatpush3.bf16.msra.mxu1 %v2671_v6  ;;  %2283 = vmatprep.mubr.msk.bf16.mxu1 %vm2572_vm0, %v2571_v0 }
 0x596   :  { %2281 = vmatprep.subr.bf16.mxu1 %v2571_v0  ;;  %2288 = vmatpush3.bf16.msra.mxu0 %v2714_v43 }
 0x597   :  { %2289 = vmatprep.subr.bf16.mxu0 %v2571_v0  ;;  %2291 = vmatprep.mubr.msk.bf16.mxu0 %vm2572_vm0, %v2571_v0 }
 0x599   :  { %2282 = vmatpush3.bf16.msra.mxu1 %v2678_v7 }
 0x59a   :  { %2295 = vmatprep.subr.bf16.mxu1 %v2571_v0  ;;  %2290 = vmatpush3.bf16.msra.mxu0 %v2721_v44 }
 0x59b   :  { %2303 = vmatprep.subr.bf16.mxu0 %v2571_v0 }
 0x64c   :  { %v753_v4 = vpop.f32.mrf.mxu0 }
 0x64d   :  { %v759_v8 = vadd.f32 %v753_v4, %v193_v3 }
 0x64e   :  { %v2261_v10 = vpop.f32.mrf.mxu0 }
 0x64f   :  { %2461 = vtanh.f32 %v759_v8  ;;  %v2048_v29 = vmul.f32 -1.442695, %v759_v8 }
 0x650   :  { %v756_v11 = vpop.f32.mrf.mxu0 }
 0x652   :  { %v2262_v12 = vpop.f32.mrf.mxu0 }
 0x654   :  { %v825_v14 = vpop.f32.mrf.mxu1  ;;  %v866_v15 = vpop.f32.mrf.mxu0 }
 0x655   :  { %v831_v16 = vadd.f32 %v2794_v19, %v825_v14 }
 0x656   :  { %v2269_v18 = vpop.f32.mrf.mxu1  ;;  %v2277_v20 = vpop.f32.mrf.mxu0 }
 0x657   :  { %v872_v22 = vadd.f32 %v866_v15, %v831_v16 }
 0x658   :  { %v828_v24 = vpop.f32.mrf.mxu1  ;;  %v869_v25 = vpop.f32.mrf.mxu0 }
 0x659   :  { %2463 = vtanh.f32 %v872_v22  ;;  %v2051_v30 = vmul.f32 -1.442695, %v872_v22 }
 0x65a   :  { %v2270_v26 = vpop.f32.mrf.mxu1  ;;  %v2278_v27 = vpop.f32.mrf.mxu0  ;;  %2465 = vpow2.f32 %v2048_v29 }
 0x65b   :  { %2467 = vpow2.f32 %v2051_v30 }
 0x65c   :  { %v2462_v28 = vpop.eup %2461 }
 0x65d   :  { %769 = vrot.lane.b32.xlu0 %v2462_v28, %s2574_s24 }
 0x666   :  { %v2464_v13 = vpop.eup %2463 }
 0x667   :  { %882 = vrot.lane.b32.xlu1 %v2464_v13, %s2574_s24  ;;  %v2466_v31 = vpop.eup %2465 }
 0x668   :  { %v763_v32 = vadd.f32 1.0, %v2466_v31  ;;  %v2468_v33 = vpop.eup %2467 }
 0x669   :  { %v876_v34 = vadd.f32 1.0, %v2468_v33 }
 0x66a   :  { %2469 = vrcp.f32 %v763_v32 }
 0x66b   :  { %2471 = vrcp.f32 %v876_v34 }
 0x677   :  { %v2470_v35 = vpop.eup %2469 }
 0x678   :  { %v2472_v38 = vpop.eup %2471  ;;  %v767_v42 = vmul.f32 %v2470_v35, %v2802_v50 }
 0x679   :  { %v880_v47 = vmul.f32 %v2472_v38, %v2805_v53 }
 0x6cf   :  { %v770_v36 = vpop.permute.xlu0 %769 }
 0x6d0   :  { %v772_v37 = vmul.f32 %v2470_v35, %v770_v36 }
 0x6d2   :  { %774 = vrot.lane.b32.xlu0 %v772_v37, %s2575_s25 }
 0x6d9   :  { %v883_v39 = vpop.permute.xlu1 %882 }
 0x6da   :  { %v885_v40 = vmul.f32 %v2472_v38, %v883_v39 }
 0x6dc   :  { %887 = vrot.lane.b32.xlu1 %v885_v40, %s2575_s25 }
 0x744   :  { %v775_v45 = vpop.permute.xlu0 %774 }
 0x745   :  { %v2841_v46 = vadd.f32 %v775_v45, %v767_v42 }
 0x747   :  { %2473 = vtanh.f32 %v2841_v46 }
 0x74e   :  { %v888_v48 = vpop.permute.xlu1 %887 }
 0x74f   :  { %v2845_v49 = vadd.f32 %v888_v48, %v880_v47 }
 0x751   :  { %2475 = vtanh.f32 %v2845_v49 }
 0x754   :  { %v2474_v51 = vpop.eup %2473 }
 0x755   :  { %780 = vrot.lane.b32.xlu0 %v2474_v51, %s2574_s24 }
 0x75e   :  { %v2476_v52 = vpop.eup %2475 }
 0x75f   :  { %893 = vrot.lane.b32.xlu1 %v2476_v52, %s2574_s24 }
 0x7c7   :  { %v781_v54 = vpop.permute.xlu0 %780 }
 0x7c8   :  { %v783_v50 = vmul.f32 %v2470_v35, %v781_v54 }
 0x7ca   :  { %v897_v55 = vpack.c.bf16 %v783_v50, %v783_v50 }
 0x7cc   :  { %899 = vrot.lane.b32.xlu0 %v897_v55, %s2575_s25 }
 0x7d1   :  { %v894_v57 = vpop.permute.xlu1 %893 }
 0x7d2   :  { %v896_v58 = vmul.f32 %v2472_v38, %v894_v57  ;;  %v283_v57 = vadd.f32 %v2696_v23, %v2689_v17 }
 0x7d4   :  { %v969_v41 = vpack.c.bf16 %v896_v58, %v896_v58 }
 0x7d6   :  { %971 = vrot.lane.b32.xlu1 %v969_v41, %s2575_s25 }
 0x83e   :  { %v900_v53 = vpop.permute.xlu0 %899 }
 0x83f   :  { %2284 = vmatmul.mubr.msk.bf16.vlgmr.msra.gmra.mxu1 %vm435_vm2, %v900_v53 }
 0x840   :  { %2296 = vmatpush3.bf16.msra.mxu1 %v2769_v5  ;;  %2299 = vmatprep.mubr.msk.bf16.mxu1 %vm2572_vm0, %v2571_v0 }
 0x841   :  { %2297 = vmatprep.subr.bf16.mxu1 %v2571_v0 }
 0x844   :  { %2298 = vmatpush3.bf16.msra.mxu1 %v2776_v9 }
 0x845   :  { %2311 = vmatprep.subr.bf16.mxu1 %v2571_v0 }
 0x847   :  { %2300 = vmatmul.mubr.msk.bf16.vlgmr.msra.gmra.mxu1 %vm435_vm2, %v900_v53 }
 0x848   :  { %v972_v59 = vpop.permute.xlu1 %971  ;;  %2312 = vmatpush3.bf16.msra.mxu1 %v2714_v43  ;;  %2315 = vmatprep.mubr.msk.bf16.mxu1 %vm2572_vm0, %v2571_v0 }
 0x849   :  { %2292 = vmatmul.mubr.msk.bf16.vlgmr.msra.gmra.mxu0 %vm435_vm2, %v972_v59  ;;  %2313 = vmatprep.subr.bf16.mxu1 %v2571_v0 }
 0x84a   :  { %2304 = vmatpush3.bf16.msra.mxu0 %v2671_v6  ;;  %2307 = vmatprep.mubr.msk.bf16.mxu0 %vm2572_vm0, %v2571_v0 }
 0x84b   :  { %2305 = vmatprep.subr.bf16.mxu0 %v2571_v0 }
 0x84c   :  { %2314 = vmatpush3.bf16.msra.mxu1 %v2721_v44 }
 0x84d   :  { %2327 = vmatprep.subr.bf16.mxu1 %v2571_v0 }
 0x84e   :  { %2306 = vmatpush3.bf16.msra.mxu0 %v2678_v7 }
 0x84f   :  { %2319 = vmatprep.subr.bf16.mxu0 %v2571_v0 }
 0x8ff   :  { %v938_v62 = vpop.f32.mrf.mxu1 }
 0x900   :  { %v944_v63 = vadd.f32 %v938_v62, %v238_v61 }
 0x901   :  { %v2285_v2 = vpop.f32.mrf.mxu1 }
 0x902   :  { %2477 = vtanh.f32 %v944_v63  ;;  %v2053_v25 = vmul.f32 -1.442695, %v944_v63 }
 0x903   :  { %v941_v3 = vpop.f32.mrf.mxu1 }
 0x905   :  { %v2286_v4 = vpop.f32.mrf.mxu1 }
 0x907   :  { %v1051_v8 = vpop.f32.mrf.mxu1 }
 0x909   :  { %v1010_v10 = vpop.f32.mrf.mxu0  ;;  %v2301_v11 = vpop.f32.mrf.mxu1 }
 0x90a   :  { %v1016_v12 = vadd.f32 %v2794_v19, %v1010_v10 }
 0x90b   :  { %v2293_v14 = vpop.f32.mrf.mxu0  ;;  %v1054_v15 = vpop.f32.mrf.mxu1 }
 0x90c   :  { %v1057_v16 = vadd.f32 %v1051_v8, %v1016_v12 }
 0x90d   :  { %v1013_v18 = vpop.f32.mrf.mxu0  ;;  %v2302_v20 = vpop.f32.mrf.mxu1 }
 0x90e   :  { %2479 = vtanh.f32 %v1057_v16  ;;  %v2056_v26 = vmul.f32 -1.442695, %v1057_v16 }
 0x90f   :  { %v2478_v22 = vpop.eup %2477  ;;  %v2294_v24 = vpop.f32.mrf.mxu0  ;;  %2481 = vpow2.f32 %v2053_v25 }
 0x910   :  { %954 = vrot.lane.b32.xlu0 %v2478_v22, %s2574_s24  ;;  %2483 = vpow2.f32 %v2056_v26 }
 0x91b   :  { %v2480_v56 = vpop.eup %2479 }
 0x91c   :  { %1067 = vrot.lane.b32.xlu1 %v2480_v56, %s2574_s24  ;;  %v2482_v27 = vpop.eup %2481 }
 0x91d   :  { %v948_v28 = vadd.f32 1.0, %v2482_v27  ;;  %v2484_v13 = vpop.eup %2483 }
 0x91e   :  { %v1061_v29 = vadd.f32 1.0, %v2484_v13 }
 0x91f   :  { %2485 = vrcp.f32 %v948_v28 }
 0x920   :  { %2487 = vrcp.f32 %v1061_v29 }
 0x92c   :  { %v2486_v30 = vpop.eup %2485 }
 0x92d   :  { %v2488_v33 = vpop.eup %2487  ;;  %v952_v36 = vmul.f32 %v2486_v30, %v2841_v46 }
 0x92e   :  { %v1065_v39 = vmul.f32 %v2488_v33, %v2845_v49 }
 0x982   :  { %v955_v31 = vpop.permute.xlu0 %954 }
 0x983   :  { %v957_v32 = vmul.f32 %v2486_v30, %v955_v31 }
 0x985   :  { %959 = vrot.lane.b32.xlu0 %v957_v32, %s2575_s25 }
 0x98e   :  { %v1068_v34 = vpop.permute.xlu1 %1067 }
 0x98f   :  { %v1070_v35 = vmul.f32 %v2488_v33, %v1068_v34 }
 0x991   :  { %1072 = vrot.lane.b32.xlu1 %v1070_v35, %s2575_s25 }
 0x9f7   :  { %v960_v37 = vpop.permute.xlu0 %959 }
 0x9f8   :  { %v2881_v38 = vadd.f32 %v960_v37, %v952_v36 }
 0x9fa   :  { %2489 = vtanh.f32 %v2881_v38 }
 0xa03   :  { %v1073_v40 = vpop.permute.xlu1 %1072 }
 0xa04   :  { %v2885_v42 = vadd.f32 %v1073_v40, %v1065_v39 }
 0xa06   :  { %2491 = vtanh.f32 %v2885_v42 }
 0xa07   :  { %v2490_v45 = vpop.eup %2489 }
 0xa08   :  { %965 = vrot.lane.b32.xlu0 %v2490_v45, %s2574_s24 }
 0xa13   :  { %v2492_v47 = vpop.eup %2491 }
 0xa14   :  { %1078 = vrot.lane.b32.xlu1 %v2492_v47, %s2574_s24 }
 0xa7a   :  { %v966_v48 = vpop.permute.xlu0 %965 }
 0xa7b   :  { %v968_v46 = vmul.f32 %v2486_v30, %v966_v48 }
 0xa7d   :  { %v1082_v51 = vpack.c.bf16 %v968_v46, %v968_v46 }
 0xa7f   :  { %1084 = vrot.lane.b32.xlu0 %v1082_v51, %s2575_s25  ;;  %v328_v51 = vadd.f32 %v2696_v23, %v2762_v60 }
 0xa86   :  { %v1079_v52 = vpop.permute.xlu1 %1078 }
 0xa87   :  { %v1081_v54 = vmul.f32 %v2488_v33, %v1079_v52 }
 0xa89   :  { %v1154_v50 = vpack.c.bf16 %v1081_v54, %v1081_v54 }
 0xa8b   :  { %1156 = vrot.lane.b32.xlu1 %v1154_v50, %s2575_s25 }
 0xaf1   :  { %v1085_v49 = vpop.permute.xlu0 %1084 }
 0xaf2   :  { %2308 = vmatmul.mubr.msk.bf16.vlgmr.msra.gmra.mxu0 %vm435_vm2, %v1085_v49 }
 0xaf3   :  { %2320 = vmatpush3.bf16.msra.mxu0 %v2769_v5  ;;  %2323 = vmatprep.mubr.msk.bf16.mxu0 %vm2572_vm0, %v2571_v0 }
 0xaf4   :  { %2321 = vmatprep.subr.bf16.mxu0 %v2571_v0 }
 0xaf7   :  { %2322 = vmatpush3.bf16.msra.mxu0 %v2776_v9 }
 0xaf8   :  { %2335 = vmatprep.subr.bf16.mxu0 %v2571_v0 }
 0xafa   :  { %2324 = vmatmul.mubr.msk.bf16.vlgmr.msra.gmra.mxu0 %vm435_vm2, %v1085_v49 }
 0xafb   :  { %2336 = vmatpush3.bf16.msra.mxu0 %v2714_v43  ;;  %2339 = vmatprep.mubr.msk.bf16.mxu0 %vm2572_vm0, %v2571_v0 }
 0xafc   :  { %2337 = vmatprep.subr.bf16.mxu0 %v2571_v0 }
 0xafd   :  { %v1157_v55 = vpop.permute.xlu1 %1156 }
 0xafe   :  { %2316 = vmatmul.mubr.msk.bf16.vlgmr.msra.gmra.mxu1 %vm435_vm2, %v1157_v55 }
 0xaff   :  { %2328 = vmatpush3.bf16.msra.mxu1 %v2671_v6  ;;  %2331 = vmatprep.mubr.msk.bf16.mxu1 %vm2572_vm0, %v2571_v0 }
 0xb00   :  { %2329 = vmatprep.subr.bf16.mxu1 %v2571_v0  ;;  %2338 = vmatpush3.bf16.msra.mxu0 %v2721_v44 }
 0xb01   :  { %2351 = vmatprep.subr.bf16.mxu0 %v2571_v0 }
 0xb03   :  { %2330 = vmatpush3.bf16.msra.mxu1 %v2678_v7 }
 0xb04   :  { %2343 = vmatprep.subr.bf16.mxu1 %v2571_v0 }
 0xbb2   :  { %v1123_v58 = vpop.f32.mrf.mxu0 }
 0xbb3   :  { %v1129_v41 = vadd.f32 %v1123_v58, %v283_v57 }
 0xbb4   :  { %v2309_v53 = vpop.f32.mrf.mxu0 }
 0xbb5   :  { %2493 = vtanh.f32 %v1129_v41  ;;  %v2058_v16 = vmul.f32 -1.442695, %v1129_v41 }
 0xbb6   :  { %v1126_v59 = vpop.f32.mrf.mxu0 }
 0xbb8   :  { %v2310_v61 = vpop.f32.mrf.mxu0 }
 0xbba   :  { %v1236_v62 = vpop.f32.mrf.mxu0 }
 0xbbc   :  { %v2325_v63 = vpop.f32.mrf.mxu0 }
 0xbbe   :  { %v1195_v2 = vpop.f32.mrf.mxu1  ;;  %v1239_v3 = vpop.f32.mrf.mxu0 }
 0xbbf   :  { %v1201_v4 = vadd.f32 %v2794_v19, %v1195_v2 }
 0xbc0   :  { %v2317_v8 = vpop.f32.mrf.mxu1  ;;  %v2326_v10 = vpop.f32.mrf.mxu0 }
 0xbc1   :  { %v1242_v11 = vadd.f32 %v1236_v62, %v1201_v4 }
 0xbc2   :  { %v2494_v12 = vpop.eup %2493  ;;  %v1198_v14 = vpop.f32.mrf.mxu1 }
 0xbc3   :  { %2495 = vtanh.f32 %v1242_v11  ;;  %1139 = vrot.lane.b32.xlu0 %v2494_v12, %s2574_s24  ;;  %v2061_v18 = vmul.f32 -1.442695, %v1242_v11 }
 0xbc4   :  { %v2318_v17 = vpop.f32.mrf.mxu1  ;;  %2497 = vpow2.f32 %v2058_v16 }
 0xbc5   :  { %2499 = vpow2.f32 %v2061_v18 }
 0xbd0   :  { %v2496_v15 = vpop.eup %2495 }
 0xbd1   :  { %1252 = vrot.lane.b32.xlu1 %v2496_v15, %s2574_s24  ;;  %v2498_v20 = vpop.eup %2497 }
 0xbd2   :  { %v1133_v22 = vadd.f32 1.0, %v2498_v20  ;;  %v2500_v24 = vpop.eup %2499 }
 0xbd3   :  { %v1246_v56 = vadd.f32 1.0, %v2500_v24 }
 0xbd4   :  { %2501 = vrcp.f32 %v1133_v22 }
 0xbd5   :  { %2503 = vrcp.f32 %v1246_v56 }
 0xbe1   :  { %v2502_v25 = vpop.eup %2501 }
 0xbe2   :  { %v2504_v28 = vpop.eup %2503  ;;  %v1137_v30 = vmul.f32 %v2502_v25, %v2881_v38 }
 0xbe3   :  { %v1250_v33 = vmul.f32 %v2504_v28, %v2885_v42 }
 0xc35   :  { %v1140_v26 = vpop.permute.xlu0 %1139 }
 0xc36   :  { %v1142_v27 = vmul.f32 %v2502_v25, %v1140_v26 }
 0xc38   :  { %1144 = vrot.lane.b32.xlu0 %v1142_v27, %s2575_s25 }
 0xc43   :  { %v1253_v13 = vpop.permute.xlu1 %1252 }
 0xc44   :  { %v1255_v29 = vmul.f32 %v2504_v28, %v1253_v13 }
 0xc46   :  { %1257 = vrot.lane.b32.xlu1 %v1255_v29, %s2575_s25 }
 0xcaa   :  { %v1145_v31 = vpop.permute.xlu0 %1144 }
 0xcab   :  { %v2921_v32 = vadd.f32 %v1145_v31, %v1137_v30 }
 0xcad   :  { %2505 = vtanh.f32 %v2921_v32 }
 0xcb8   :  { %v1258_v34 = vpop.permute.xlu1 %1257 }
 0xcb9   :  { %v2925_v35 = vadd.f32 %v1258_v34, %v1250_v33 }
 0xcba   :  { %v2506_v36 = vpop.eup %2505 }
 0xcbb   :  { %2507 = vtanh.f32 %v2925_v35  ;;  %1150 = vrot.lane.b32.xlu0 %v2506_v36, %s2574_s24 }
 0xcc8   :  { %v2508_v37 = vpop.eup %2507 }
 0xcc9   :  { %1263 = vrot.lane.b32.xlu1 %v2508_v37, %s2574_s24  ;;  %v2565_v37 = vld [vmem:[%s3082_s2 + $0x8] sm:$0xff]  }
 0xd2d   :  { %v1151_v39 = vpop.permute.xlu0 %1150 }
 0xd2e   :  { %v1153_v38 = vmul.f32 %v2502_v25, %v1151_v39 }
 0xd30   :  { %v1267_v40 = vpack.c.bf16 %v1153_v38, %v1153_v38 }
 0xd32   :  { %1269 = vrot.lane.b32.xlu0 %v1267_v40, %s2575_s25 }
 0xd3b   :  { %v1264_v45 = vpop.permute.xlu1 %1263 }
 0xd3c   :  { %v1266_v47 = vmul.f32 %v2504_v28, %v1264_v45 }
 0xd3e   :  { %v1339_v48 = vpack.c.bf16 %v1266_v47, %v1266_v47 }
 0xd40   :  { %1341 = vrot.lane.b32.xlu1 %v1339_v48, %s2575_s25 }
 0xda4   :  { %v1270_v42 = vpop.permute.xlu0 %1269 }
 0xda5   :  { %2332 = vmatmul.mubr.msk.bf16.vlgmr.msra.gmra.mxu1 %vm435_vm2, %v1270_v42 }
 0xda6   :  { %2344 = vmatpush3.bf16.msra.mxu1 %v2769_v5  ;;  %2347 = vmatprep.mubr.msk.bf16.mxu1 %vm2572_vm0, %v2571_v0 }
 0xda7   :  { %2345 = vmatprep.subr.bf16.mxu1 %v2571_v0 }
 0xdaa   :  { %2346 = vmatpush3.bf16.msra.mxu1 %v2776_v9 }
 0xdab   :  { %2359 = vmatprep.subr.bf16.mxu1 %v2571_v0 }
 0xdad   :  { %2348 = vmatmul.mubr.msk.bf16.vlgmr.msra.gmra.mxu1 %vm435_vm2, %v1270_v42 }
 0xdae   :  { %2360 = vmatpush3.bf16.msra.mxu1 %v2714_v43  ;;  %2363 = vmatprep.mubr.msk.bf16.mxu1 %vm2572_vm0, %v2571_v0 }
 0xdaf   :  { %2361 = vmatprep.subr.bf16.mxu1 %v2571_v0 }
 0xdb2   :  { %v1342_v46 = vpop.permute.xlu1 %1341  ;;  %2362 = vmatpush3.bf16.msra.mxu1 %v2721_v44 }
 0xdb3   :  { %2340 = vmatmul.mubr.msk.bf16.vlgmr.msra.gmra.mxu0 %vm435_vm2, %v1342_v46  ;;  %2375 = vmatprep.subr.bf16.mxu1 %v2571_v0 }
 0xdb4   :  { %2352 = vmatpush3.bf16.msra.mxu0 %v2671_v6  ;;  %2355 = vmatprep.mubr.msk.bf16.mxu0 %vm2572_vm0, %v2571_v0 }
 0xdb5   :  { %2353 = vmatprep.subr.bf16.mxu0 %v2571_v0 }
 0xdb8   :  { %2354 = vmatpush3.bf16.msra.mxu0 %v2678_v7 }
 0xdb9   :  { %2367 = vmatprep.subr.bf16.mxu0 %v2571_v0 }
 0xe65   :  { %v1308_v52 = vpop.f32.mrf.mxu1 }
 0xe66   :  { %v1314_v54 = vadd.f32 %v1308_v52, %v328_v51 }
 0xe67   :  { %v2333_v50 = vpop.f32.mrf.mxu1 }
 0xe68   :  { %2509 = vtanh.f32 %v1314_v54  ;;  %v2063_v3 = vmul.f32 -1.442695, %v1314_v54 }
 0xe69   :  { %v1311_v49 = vpop.f32.mrf.mxu1 }
 0xe6b   :  { %v2334_v55 = vpop.f32.mrf.mxu1 }
 0xe6d   :  { %v1421_v57 = vpop.f32.mrf.mxu1 }
 0xe6f   :  { %v2349_v6 = vpop.f32.mrf.mxu1 }
 0xe71   :  { %v1424_v58 = vpop.f32.mrf.mxu1 }
 0xe73   :  { %v1380_v41 = vpop.f32.mrf.mxu0  ;;  %v2350_v53 = vpop.f32.mrf.mxu1 }
 0xe74   :  { %v1386_v59 = vadd.f32 %v2794_v19, %v1380_v41 }
 0xe75   :  { %v2510_v61 = vpop.eup %2509  ;;  %v2341_v7 = vpop.f32.mrf.mxu0 }
 0xe76   :  { %v1427_v62 = vadd.f32 %v1421_v57, %v1386_v59  ;;  %1324 = vrot.lane.b32.xlu0 %v2510_v61, %s2574_s24 }
 0xe77   :  { %v1383_v63 = vpop.f32.mrf.mxu0 }
 0xe78   :  { %2511 = vtanh.f32 %v1427_v62  ;;  %v2066_v4 = vmul.f32 -1.442695, %v1427_v62 }
 0xe79   :  { %v2342_v60 = vpop.f32.mrf.mxu0  ;;  %2513 = vpow2.f32 %v2063_v3 }
 0xe7a   :  { %2515 = vpow2.f32 %v2066_v4 }
 0xe85   :  { %v2512_v2 = vpop.eup %2511 }
 0xe86   :  { %1437 = vrot.lane.b32.xlu1 %v2512_v2, %s2574_s24  ;;  %v2514_v8 = vpop.eup %2513 }
 0xe87   :  { %v1318_v10 = vadd.f32 1.0, %v2514_v8  ;;  %v2516_v11 = vpop.eup %2515 }
 0xe88   :  { %v1431_v12 = vadd.f32 1.0, %v2516_v11 }
 0xe89   :  { %2517 = vrcp.f32 %v1318_v10 }
 0xe8a   :  { %2519 = vrcp.f32 %v1431_v12 }
 0xe96   :  { %v2518_v14 = vpop.eup %2517 }
 0xe97   :  { %v2520_v16 = vpop.eup %2519  ;;  %v1322_v22 = vmul.f32 %v2518_v14, %v2921_v32 }
 0xe98   :  { %v1435_v25 = vmul.f32 %v2520_v16, %v2925_v35 }
 0xee8   :  { %v1325_v17 = vpop.permute.xlu0 %1324 }
 0xee9   :  { %v1327_v15 = vmul.f32 %v2518_v14, %v1325_v17 }
 0xeeb   :  { %1329 = vrot.lane.b32.xlu0 %v1327_v15, %s2575_s25 }
 0xef8   :  { %v1438_v18 = vpop.permute.xlu1 %1437 }
 0xef9   :  { %v1440_v20 = vmul.f32 %v2520_v16, %v1438_v18 }
 0xefb   :  { %1442 = vrot.lane.b32.xlu1 %v1440_v20, %s2575_s25 }
 0xf5d   :  { %v1330_v24 = vpop.permute.xlu0 %1329 }
 0xf5e   :  { %v2961_v56 = vadd.f32 %v1330_v24, %v1322_v22 }
 0xf60   :  { %2521 = vtanh.f32 %v2961_v56 }
 0xf6d   :  { %v2522_v26 = vpop.eup %2521  ;;  %v1443_v27 = vpop.permute.xlu1 %1442 }
 0xf6e   :  { %v2965_v28 = vadd.f32 %v1443_v27, %v1435_v25  ;;  %1335 = vrot.lane.b32.xlu0 %v2522_v26, %s2574_s24  ;;  %v2567_v27 = vld [vmem:[%s3084_s5 + $0x8] sm:$0xff]  }
 0xf70   :  { %2523 = vtanh.f32 %v2965_v28 }
 0xf7d   :  { %v2524_v13 = vpop.eup %2523 }
 0xf7e   :  { %1448 = vrot.lane.b32.xlu1 %v2524_v13, %s2574_s24 }
 0xfe0   :  { %v1336_v29 = vpop.permute.xlu0 %1335 }
 0xfe1   :  { %v1338_v30 = vmul.f32 %v2518_v14, %v1336_v29 }
 0xfe3   :  { %v1452_v31 = vpack.c.bf16 %v1338_v30, %v1338_v30 }
 0xfe5   :  { %1454 = vrot.lane.b32.xlu0 %v1452_v31, %s2575_s25 }
 0xff0   :  { %v1449_v32 = vpop.permute.xlu1 %1448 }
 0xff1   :  { %v1451_v33 = vmul.f32 %v2520_v16, %v1449_v32 }
 0xff3   :  { %v1524_v34 = vpack.c.bf16 %v1451_v33, %v1451_v33 }
 0xff5   :  { %1526 = vrot.lane.b32.xlu1 %v1524_v34, %s2575_s25 }
0x1057   :  { %v1455_v35 = vpop.permute.xlu0 %1454 }
0x1058   :  { %2356 = vmatmul.mubr.msk.bf16.vlgmr.msra.gmra.mxu0 %vm435_vm2, %v1455_v35 }
0x1059   :  { %2368 = vmatpush3.bf16.msra.mxu0 %v2769_v5  ;;  %2371 = vmatprep.mubr.msk.bf16.mxu0 %vm2572_vm0, %v2571_v0 }
0x105a   :  { %2369 = vmatprep.subr.bf16.mxu0 %v2571_v0 }
0x105d   :  { %2370 = vmatpush3.bf16.msra.mxu0 %v2776_v9 }
0x105e   :  { %2383 = vmatprep.subr.bf16.mxu0 %v2571_v0 }
0x1060   :  { %2372 = vmatmul.mubr.msk.bf16.vlgmr.msra.gmra.mxu0 %vm435_vm2, %v1455_v35 }
0x1061   :  { %2384 = vmatpush3.bf16.msra.mxu0 %v2714_v43  ;;  %2387 = vmatprep.mubr.msk.bf16.mxu0 %vm2572_vm0, %v2571_v0  ;;  %v2566_v43 = vld [vmem:[%s3082_s2] sm:$0xff]  }
0x1062   :  { %2385 = vmatprep.subr.bf16.mxu0 %v2571_v0 }
0x1065   :  { %2386 = vmatpush3.bf16.msra.mxu0 %v2721_v44  ;;  %v373_v44 = vadd.f32 %v2696_v23, %v2691_v21 }
0x1066   :  { %2399 = vmatprep.subr.bf16.mxu0 %v2571_v0 }
0x1067   :  { %v1527_v36 = vpop.permute.xlu1 %1526 }
0x1068   :  { %2364 = vmatmul.mubr.msk.bf16.vlgmr.msra.gmra.mxu1 %vm435_vm2, %v1527_v36 }
0x1069   :  { %2376 = vmatpush3.bf16.msra.mxu1 %v2565_v37  ;;  %2379 = vmatprep.mubr.msk.bf16.mxu1 %vm2572_vm0, %v2571_v0 }
0x106a   :  { %2377 = vmatprep.subr.bf16.mxu1 %v2571_v0 }
0x106d   :  { %2378 = vmatpush3.bf16.msra.mxu1 %v2566_v43 }
0x106e   :  { %2391 = vmatprep.subr.bf16.mxu1 %v2571_v0 }
0x1118   :  { %v1493_v39 = vpop.f32.mrf.mxu0 }
0x1119   :  { %v1499_v38 = vadd.f32 %v1493_v39, %v373_v44 }
0x111a   :  { %v2357_v40 = vpop.f32.mrf.mxu0 }
0x111b   :  { %2525 = vtanh.f32 %v1499_v38  ;;  %v2068_v6 = vmul.f32 -1.442695, %v1499_v38 }
0x111c   :  { %v1496_v45 = vpop.f32.mrf.mxu0 }
0x111e   :  { %v2358_v47 = vpop.f32.mrf.mxu0 }
0x1120   :  { %v1606_v48 = vpop.f32.mrf.mxu0 }
0x1122   :  { %v2373_v42 = vpop.f32.mrf.mxu0 }
0x1124   :  { %v1609_v46 = vpop.f32.mrf.mxu0 }
0x1126   :  { %v2374_v51 = vpop.f32.mrf.mxu0 }
0x1128   :  { %v2526_v52 = vpop.eup %2525  ;;  %v1565_v54 = vpop.f32.mrf.mxu1 }
0x1129   :  { %v1571_v50 = vadd.f32 %v2794_v19, %v1565_v54  ;;  %1509 = vrot.lane.b32.xlu0 %v2526_v52, %s2574_s24 }
0x112a   :  { %v2365_v49 = vpop.f32.mrf.mxu1 }
0x112b   :  { %v1612_v55 = vadd.f32 %v1606_v48, %v1571_v50 }
0x112c   :  { %v1568_v57 = vpop.f32.mrf.mxu1 }
0x112d   :  { %2527 = vtanh.f32 %v1612_v55  ;;  %v2071_v41 = vmul.f32 -1.442695, %v1612_v55 }
0x112e   :  { %v2366_v21 = vpop.f32.mrf.mxu1  ;;  %2529 = vpow2.f32 %v2068_v6 }
0x112f   :  { %2531 = vpow2.f32 %v2071_v41 }
0x113a   :  { %v2528_v23 = vpop.eup %2527 }
0x113b   :  { %1622 = vrot.lane.b32.xlu1 %v2528_v23, %s2574_s24  ;;  %v2530_v58 = vpop.eup %2529 }
0x113c   :  { %v1503_v53 = vadd.f32 1.0, %v2530_v58  ;;  %v2532_v59 = vpop.eup %2531 }
0x113d   :  { %v1616_v63 = vadd.f32 1.0, %v2532_v59 }
0x113e   :  { %2533 = vrcp.f32 %v1503_v53 }
0x113f   :  { %2535 = vrcp.f32 %v1616_v63 }
0x114b   :  { %v2534_v61 = vpop.eup %2533 }
0x114c   :  { %v2536_v60 = vpop.eup %2535  ;;  %v1507_v4 = vmul.f32 %v2534_v61, %v2961_v56 }
0x114d   :  { %v1620_v12 = vmul.f32 %v2536_v60, %v2965_v28 }
0x119b   :  { %v1510_v7 = vpop.permute.xlu0 %1509 }
0x119c   :  { %v1512_v62 = vmul.f32 %v2534_v61, %v1510_v7 }
0x119e   :  { %1514 = vrot.lane.b32.xlu0 %v1512_v62, %s2575_s25 }
0x11ad   :  { %v1623_v2 = vpop.permute.xlu1 %1622 }
0x11ae   :  { %v1625_v3 = vmul.f32 %v2536_v60, %v1623_v2 }
0x11b0   :  { %1627 = vrot.lane.b32.xlu1 %v1625_v3, %s2575_s25 }
0x1210   :  { %v1515_v8 = vpop.permute.xlu0 %1514 }
0x1211   :  { %v3005_v10 = vadd.f32 %v1515_v8, %v1507_v4 }
0x1213   :  { %2537 = vtanh.f32 %v3005_v10 }
0x1220   :  { %v2538_v11 = vpop.eup %2537 }
0x1221   :  { %1520 = vrot.lane.b32.xlu0 %v2538_v11, %s2574_s24 }
0x1222   :  { %v1628_v14 = vpop.permute.xlu1 %1627 }
0x1223   :  { %v3010_v17 = vadd.f32 %v1628_v14, %v1620_v12 }
0x1225   :  { %2539 = vtanh.f32 %v3010_v17 }
0x1232   :  { %v2540_v15 = vpop.eup %2539 }
0x1233   :  { %1633 = vrot.lane.b32.xlu1 %v2540_v15, %s2574_s24  ;;  %v2570_v15 = vld [vmem:[%s3086_s6] ss:$0 sm:$0xff] }
0x1293   :  { %v1521_v16 = vpop.permute.xlu0 %1520 }
0x1294   :  { %v1523_v18 = vmul.f32 %v2534_v61, %v1521_v16 }
0x1296   :  { %v1637_v20 = vpack.c.bf16 %v1523_v18, %v1523_v18 }
0x1298   :  { %1639 = vrot.lane.b32.xlu0 %v1637_v20, %s2575_s25 }
0x12a5   :  { %v1634_v22 = vpop.permute.xlu1 %1633 }
0x12a6   :  { %v1636_v24 = vmul.f32 %v2536_v60, %v1634_v22 }
0x12a8   :  { %v1709_v56 = vpack.c.bf16 %v1636_v24, %v1636_v24 }
0x12aa   :  { %1711 = vrot.lane.b32.xlu1 %v1709_v56, %s2575_s25 }
0x130a   :  { %v1640_v25 = vpop.permute.xlu0 %1639 }
0x130b   :  { %2380 = vmatmul.mubr.msk.bf16.vlgmr.msra.gmra.mxu1 %vm435_vm2, %v1640_v25 }
0x130c   :  { %2392 = vmatpush3.bf16.msra.mxu1 %v2769_v5  ;;  %2395 = vmatprep.mubr.msk.bf16.mxu1 %vm2572_vm0, %v2571_v0 }
0x130d   :  { %2393 = vmatprep.subr.bf16.mxu1 %v2571_v0 }
0x1310   :  { %2394 = vmatpush3.bf16.msra.mxu1 %v2776_v9 }
0x1311   :  { %2407 = vmatprep.subr.bf16.mxu1 %v2571_v0 }
0x1313   :  { %2396 = vmatmul.mubr.msk.bf16.vlgmr.msra.gmra.mxu1 %vm435_vm2, %v1640_v25 }
0x1314   :  { %2408 = vmatpush3.bf16.msra.mxu1 %v2769_v5  ;;  %2411 = vmatprep.mubr.msk.bf16.mxu1 %vm2572_vm0, %v2571_v0  ;;  %v2568_v5 = vld [vmem:[%s3084_s5] sm:$0xff]  }
0x1315   :  { %2409 = vmatprep.subr.bf16.mxu1 %v2571_v0 }
0x1318   :  { %2410 = vmatpush3.bf16.msra.mxu1 %v2776_v9  ;;  %v2569_v9 = vld [vmem:[%s3083_s3] ss:$0 sm:$0xff] }
0x1319   :  { %v418_v28 = vadd.f32 %v2569_v9, %v2764_v1 }
0x131c   :  { %v1712_v26 = vpop.permute.xlu1 %1711 }
0x131d   :  { %2388 = vmatmul.mubr.msk.bf16.vlgmr.msra.gmra.mxu0 %vm435_vm2, %v1712_v26 }
0x131e   :  { %2400 = vmatpush3.bf16.msra.mxu0 %v2567_v27  ;;  %2403 = vmatprep.mubr.msk.bf16.mxu0 %vm2572_vm0, %v2571_v0 }
0x131f   :  { %2401 = vmatprep.subr.bf16.mxu0 %v2571_v0 }
0x1322   :  { %2402 = vmatpush3.bf16.msra.mxu0 %v2568_v5 }
0x1323   :  { %2415 = vmatprep.subr.bf16.mxu0 %v2571_v0 }
0x13cb   :  { %v1678_v13 = vpop.f32.mrf.mxu1 }
0x13cc   :  { %v1684_v29 = vadd.f32 %v1678_v13, %v418_v28 }
0x13cd   :  { %v2381_v30 = vpop.f32.mrf.mxu1 }
0x13ce   :  { %2541 = vtanh.f32 %v1684_v29  ;;  %v2073_v47 = vmul.f32 -1.442695, %v1684_v29 }
0x13cf   :  { %v1681_v31 = vpop.f32.mrf.mxu1 }
0x13d0   :  { %v2435_v31 = vld [vmem:[%s3087_s7 + $0x8] sm:$0xff]  }
0x13d1   :  { %v2382_v32 = vpop.f32.mrf.mxu1 }
0x13d2   :  { %v2436_v32 = vld [vmem:[%s3087_s7] sm:$0xff]  }
0x13d3   :  { %v1791_v33 = vpop.f32.mrf.mxu1 }
0x13d5   :  { %v2397_v34 = vpop.f32.mrf.mxu1 }
0x13d6   :  { %v14_v34 = vstv %s3088_s8 }
0x13d7   :  { %v1794_v35 = vpop.f32.mrf.mxu1  ;;  %15 = vst [vmem:[#allocation2] sm:$0x1] %v14_v34 }
0x13d9   :  { %v2398_v36 = vpop.f32.mrf.mxu1 }
0x13db   :  { %v2542_v37 = vpop.eup %2541 }
0x13dc   :  { %1694 = vrot.lane.b32.xlu1 %v2542_v37, %s2574_s24 }
0x13dd   :  { %v1750_v43 = vpop.f32.mrf.mxu0 }
0x13de   :  { %v1756_v44 = vadd.f32 %v2794_v19, %v1750_v43 }
0x13df   :  { %v2389_v39 = vpop.f32.mrf.mxu0 }
0x13e0   :  { %v1797_v38 = vadd.f32 %v1791_v33, %v1756_v44  ;;  %v2080_v44 = vld [vmem:[#allocation2] ss:$0 sm:$0xff] }
0x13e1   :  { %v1753_v40 = vpop.f32.mrf.mxu0 }
0x13e2   :  { %2543 = vtanh.f32 %v1797_v38  ;;  %v2076_v46 = vmul.f32 -1.442695, %v1797_v38 }
0x13e3   :  { %v2390_v1 = vpop.f32.mrf.mxu0  ;;  %2545 = vpow2.f32 %v2073_v47 }
0x13ef   :  { %v2544_v45 = vpop.eup %2543 }
0x13f0   :  { %1807 = vrot.lane.b32.xlu0 %v2544_v45, %s2574_s24  ;;  %v2546_v48 = vpop.eup %2545 }
0x13f1   :  { %v1688_v42 = vadd.f32 1.0, %v2546_v48 }
0x13f3   :  { %2547 = vrcp.f32 %v1688_v42 }
0x13f4   :  { %2549 = vpow2.f32 %v2076_v46 }
0x1400   :  { %v2548_v51 = vpop.eup %2547 }
0x1401   :  { %v2550_v54 = vpop.eup %2549  ;;  %v1692_v21 = vmul.f32 %v2548_v51, %v3005_v10 }
0x1402   :  { %v1801_v19 = vadd.f32 1.0, %v2550_v54 }
0x1404   :  { %2551 = vrcp.f32 %v1801_v19 }
0x1411   :  { %v2552_v49 = vpop.eup %2551 }
0x1412   :  { %v1805_v41 = vmul.f32 %v2552_v49, %v3010_v17 }
0x144e   :  { %v1695_v52 = vpop.permute.xlu1 %1694 }
0x144f   :  { %v1697_v50 = vmul.f32 %v2548_v51, %v1695_v52 }
0x1451   :  { %1699 = vrot.lane.b32.xlu1 %v1697_v50, %s2575_s25 }
0x1462   :  { %v1808_v55 = vpop.permute.xlu0 %1807 }
0x1463   :  { %v1810_v57 = vmul.f32 %v2552_v49, %v1808_v55 }
0x1465   :  { %1812 = vrot.lane.b32.xlu0 %v1810_v57, %s2575_s25 }
0x14c3   :  { %v1700_v23 = vpop.permute.xlu1 %1699 }
0x14c4   :  { %v1702_v6 = vadd.f32 %v1700_v23, %v1692_v21 }
0x14c6   :  { %2553 = vtanh.f32 %v1702_v6 }
0x14d3   :  { %v2554_v58 = vpop.eup %2553 }
0x14d4   :  { %1705 = vrot.lane.b32.xlu1 %v2554_v58, %s2574_s24 }
0x14d7   :  { %v1813_v53 = vpop.permute.xlu0 %1812 }
0x14d8   :  { %v1815_v59 = vadd.f32 %v1813_v53, %v1805_v41 }
0x14da   :  { %2555 = vtanh.f32 %v1815_v59 }
0x14e7   :  { %v2556_v61 = vpop.eup %2555 }
0x14e8   :  { %1818 = vrot.lane.b32.xlu0 %v2556_v61, %s2574_s24 }
0x1546   :  { %v1706_v7 = vpop.permute.xlu1 %1705 }
0x1547   :  { %v1708_v62 = vmul.f32 %v2548_v51, %v1706_v7 }
0x1549   :  { %v1870_v63 = vpack.c.bf16 %v1708_v62, %v1708_v62 }
0x154b   :  { %1872 = vrot.lane.b32.xlu1 %v1870_v63, %s2575_s25 }
0x155a   :  { %v1819_v60 = vpop.permute.xlu0 %1818 }
0x155b   :  { %v1821_v2 = vmul.f32 %v2552_v49, %v1819_v60 }
0x155d   :  { %v1822_v3 = vpack.c.bf16 %v1821_v2, %v1821_v2 }
0x155f   :  { %1824 = vrot.lane.b32.xlu0 %v1822_v3, %s2575_s25 }
0x15bd   :  { %v1873_v4 = vpop.permute.xlu1 %1872 }
0x15be   :  { %2412 = vmatmul.mubr.msk.bf16.vlgmr.msra.gmra.mxu1 %vm435_vm2, %v1873_v4 }
0x15d1   :  { %v1825_v8 = vpop.permute.xlu0 %1824 }
0x15d2   :  { %2404 = vmatmul.mubr.msk.bf16.vlgmr.msra.gmra.mxu0 %vm435_vm2, %v1825_v8 }
0x15d3   :  { %2419 = vmatprep.mubr.msk.bf16.mxu0 %vm2572_vm0, %v2571_v0  ;;  %2416 = vmatpush3.bf16.msra.mxu0 %v2435_v31 }
0x15d4   :  { %2417 = vmatprep.subr.bf16.mxu0 %v2571_v0 }
0x15d7   :  { %2418 = vmatpush3.bf16.msra.mxu0 %v2436_v32 }
0x167e   :  { %v1911_v10 = vpop.f32.mrf.mxu1 }
0x1680   :  { %v2413_v11 = vpop.f32.mrf.mxu1 }
0x1682   :  { %v1914_v12 = vpop.f32.mrf.mxu1 }
0x1684   :  { %v2414_v14 = vpop.f32.mrf.mxu1 }
0x1692   :  { %v1863_v17 = vpop.f32.mrf.mxu0 }
0x1693   :  { %v1869_v16 = vadd.f32 %v2570_v15, %v1863_v17 }
0x1694   :  { %v2405_v18 = vpop.f32.mrf.mxu0 }
0x1695   :  { %v1917_v20 = vadd.f32 %v1911_v10, %v1869_v16 }
0x1696   :  { %v1866_v22 = vpop.f32.mrf.mxu0 }
0x1697   :  { %2557 = vtanh.f32 %v1917_v20  ;;  %v2079_v25 = vmul.f32 -1.442695, %v1917_v20 }
0x1698   :  { %v2406_v24 = vpop.f32.mrf.mxu0 }
0x1699   :  { %2559 = vpow2.f32 %v2079_v25 }
0x16a4   :  { %v2558_v56 = vpop.eup %2557 }
0x16a5   :  { %1927 = vrot.lane.b32.xlu0 %v2558_v56, %s2574_s24 }
0x16a6   :  { %v2560_v26 = vpop.eup %2559 }
0x16a7   :  { %v1921_v27 = vadd.f32 1.0, %v2560_v26 }
0x16a9   :  { %2561 = vrcp.f32 %v1921_v27 }
0x16b6   :  { %v2562_v5 = vpop.eup %2561 }
0x16b7   :  { %v1925_v13 = vmul.f32 %v2562_v5, %v1815_v59 }
0x1717   :  { %v1928_v9 = vpop.permute.xlu0 %1927 }
0x1718   :  { %v1930_v28 = vmul.f32 %v2562_v5, %v1928_v9 }
0x171a   :  { %1932 = vrot.lane.b32.xlu1 %v1930_v28, %s2575_s25 }
0x178c   :  { %v1933_v29 = vpop.permute.xlu1 %1932 }
0x178d   :  { %v1935_v30 = vadd.f32 %v1933_v29, %v1925_v13 }
0x178f   :  { %2563 = vtanh.f32 %v1935_v30 }
0x179c   :  { %v2564_v33 = vpop.eup %2563 }
0x179d   :  { %1938 = vrot.lane.b32.xlu0 %v2564_v33, %s2574_s24 }
0x180f   :  { %v1939_v35 = vpop.permute.xlu0 %1938 }
0x1810   :  { %v1941_v36 = vmul.f32 %v2562_v5, %v1939_v35 }
0x1812   :  { %v1942_v37 = vpack.c.bf16 %v1941_v36, %v1941_v36 }
0x1814   :  { %1955 = vrot.lane.b32.xlu1 %v1942_v37, %s2575_s25 }
0x1886   :  { %v1956_v43 = vpop.permute.xlu1 %1955 }
0x1887   :  { %2420 = vmatmul.mubr.msk.bf16.vlgmr.msra.gmra.mxu0 %vm435_vm2, %v1956_v43 }
0x1947   :  { %v2006_v39 = vpop.f32.mrf.mxu0 }
0x1948   :  { %v2007_v0 = vadd.f32 %v2080_v44, %v2006_v39 }
0x1949   :  { %v2421_v38 = vpop.f32.mrf.mxu0 }
0x194a   :  { %2013 = vst.msk [vmem:[%s3089_s9] sm:$0x3] %vm2012_vm3, %v2007_v0 }
0x194b   :  { %v2009_v40 = vpop.f32.mrf.mxu0 }
0x194d   :  { %v2422_v1 = vpop.f32.mrf.mxu0 }

</bundles_post_ra>
